<compile_context>
chip_gen: v7x
topology: tpu7x:2x2x1
jax: 0.10.0
libtpu: 0.0.40
codegen_flags: <defaults>
</compile_context>

<pallas_src>
import functools

import jax
import jax.numpy as jnp
import numpy as np
from jax import lax
from jax.experimental import pallas as pl
from jax.experimental.pallas import tpu as pltpu


def _round_up(x, m):
    return (x + m - 1) // m * m


def _pad_to(x, shape):
    pads = [(0, t - s) for s, t in zip(x.shape, shape)]
    return jnp.pad(x, pads)


def _weight_spec(shape):
    """Grid-invariant weight BlockSpec, single-buffered when supported."""
    idx = lambda i: (0,) * len(shape)
    try:
        return pl.BlockSpec(shape, idx, pipeline_mode=pl.Buffered(1))
    except (TypeError, AttributeError):
        return pl.BlockSpec(shape, idx)


# ---------------------------------------------------------------------------
# target_l == 1 (decode) kernel: fully 2-D blocks, batch on sublanes.
# ---------------------------------------------------------------------------
def _ga_kernel_2d(approx_recip, len_ref, src_ref, mem_ref, w_cat_ref, w_c_ref,
                  attn_h_ref, align_ref):
    bb, d = src_ref.shape
    src = src_ref[...]                       # (B, d)     compute dtype
    mem = mem_ref[...]                       # (B, S, d)  compute dtype

    # Fused src-side projection: one dense MXU matmul gives [h_t | src @ W_s^T].
    both = jnp.dot(src, w_cat_ref[...], preferred_element_type=jnp.float32)
    h_t = both[:, :d].astype(mem.dtype)      # (B, d)  linear_in(src)
    src_ws = both[:, d:]                     # (B, d)  f32, src half of linear_out

    # score(): per-batch contraction over d (t=1 batched matmul on the MXU);
    # the singleton axis lives only around the einsum, softmax runs dense.
    scores = jnp.einsum('btd,bsd->bts', h_t[:, None, :], mem,
                        preferred_element_type=jnp.float32)[:, 0, :]   # (B, S) f32

    # sequence_mask with a finite fill (padded key columns masked too).
    lengths = len_ref[...]                   # (B, 1) int32
    col = lax.broadcasted_iota(jnp.int32, scores.shape, dimension=1)
    scores = jnp.where(col < lengths, scores, jnp.float32(-1e30))

    # softmax over src_len, f32 elementwise on dense (B, S) vregs.
    m = jnp.max(scores, axis=-1, keepdims=True)
    e = jnp.exp(scores - m)
    denom = jnp.sum(e, axis=-1, keepdims=True)
    if approx_recip:
        align = e * pl.reciprocal(denom, approx=True)    # EUP slot
    else:
        align = e / denom                                # exact f32 path

    # context = bmm(align, memory_bank)
    c = jnp.einsum('bts,bsd->btd', align[:, None, :].astype(mem.dtype), mem,
                   preferred_element_type=jnp.float32)[:, 0, :]        # (B, d) f32

    # linear_out(cat([c, src])) = c @ W_c^T + src @ W_s^T (second half fused above).
    out = jnp.dot(c.astype(src.dtype), w_c_ref[...],
                  preferred_element_type=jnp.float32) + src_ws

    attn_h_ref[...] = jnp.tanh(out).astype(attn_h_ref.dtype)
    align_ref[...] = align.astype(align_ref.dtype)


# ---------------------------------------------------------------------------
# General target_l > 1 kernel (3-D blocks).
# ---------------------------------------------------------------------------
def _ga_kernel_3d(approx_recip, len_ref, src_ref, mem_ref, w_cat_ref, w_c_ref,
                  attn_h_ref, align_ref):
    tb, tgt, d = src_ref.shape
    src = src_ref[...]                       # (B, T, d)
    mem = mem_ref[...]                       # (B, S, d)

    src2 = src.reshape(tb * tgt, d)
    both = jnp.dot(src2, w_cat_ref[...], preferred_element_type=jnp.float32)
    h_t = both[:, :d].astype(mem.dtype).reshape(tb, tgt, d)
    src_ws = both[:, d:].reshape(tb, tgt, d)              # f32

    scores = jnp.einsum('btd,bsd->bts', h_t, mem,
                        preferred_element_type=jnp.float32)   # (B, T, S) f32

    lengths = len_ref[...]                   # (B, 1) int32
    col = lax.broadcasted_iota(jnp.int32, scores.shape, dimension=2)
    scores = jnp.where(col < lengths[:, :, None], scores, jnp.float32(-1e30))

    m = jnp.max(scores, axis=-1, keepdims=True)
    e = jnp.exp(scores - m)
    denom = jnp.sum(e, axis=-1, keepdims=True)
    if approx_recip:
        align = e * pl.reciprocal(denom, approx=True)
    else:
        align = e / denom

    c = jnp.einsum('bts,bsd->btd', align.astype(mem.dtype), mem,
                   preferred_element_type=jnp.float32)

    c2 = c.astype(src.dtype).reshape(tb * tgt, d)
    out = (jnp.dot(c2, w_c_ref[...], preferred_element_type=jnp.float32)
           .reshape(tb, tgt, d) + src_ws)

    attn_h_ref[...] = jnp.tanh(out).astype(attn_h_ref.dtype)
    align_ref[...] = align.astype(align_ref.dtype)


def global_attention(source, memory_bank, memory_lengths, w_in, w_out,
                     *, block_b=None, matmul_dtype=jnp.float32,
                     approx_recip=None, out_dtype=jnp.float32):
    """source: [target_l, batch, dim]; memory_bank: [batch, src_len, dim];
    memory_lengths: [batch]; w_in = nn.Linear(dim, dim, bias=False).weight;
    w_out = nn.Linear(2*dim, dim, bias=False).weight (dim, 2*dim).
    Returns (attn_h, align), squeezed over target_l when target_l == 1."""
    source_t = jnp.transpose(source, (1, 0, 2))        # [batch, target_l, dim]
    batch, src_len, dim = memory_bank.shape
    _, target_l, _ = source_t.shape
    matmul_dtype = jnp.dtype(matmul_dtype)
    out_dtype = jnp.dtype(out_dtype)
    if approx_recip is None:
        approx_recip = matmul_dtype != jnp.float32     # keep the f32 path exact

    # Lane-dense padding of the two minor axes.
    dim_p = _round_up(dim, 128)
    src_len_p = _round_up(src_len, 128)
    itm = matmul_dtype.itemsize
    otm = out_dtype.itemsize

    # ---- per-generation VMEM budget -> block_b ----
    try:
        phys_vmem = int(pltpu.get_tpu_info().vmem_capacity_bytes)
    except Exception:
        phys_vmem = 64 << 20                           # conservative fallback
    cap = (100 << 20) if phys_vmem >= (120 << 20) else (48 << 20)

    weight_bytes = 3 * dim_p * dim_p * itm             # W_cat + W_c, Buffered(1)
    per_row_io = (target_l * dim_p * itm               # source tile
                  + src_len_p * dim_p * itm            # memory-bank tile
                  + target_l * dim_p * otm             # attn_h out tile
                  + target_l * src_len_p * otm         # align out tile
                  + 4)                                 # lengths
    per_row_tmp = (3 * target_l * src_len_p * 4        # scores / e / align (f32)
                   + 4 * target_l * dim_p * 4)         # h_t / src_ws / c / pre-tanh
    avail = cap - weight_bytes - (2 << 20)             # slack for internal scratch
    if block_b is None:
        block_b = int(avail // (2 * per_row_io + per_row_tmp))
    block_b = min(block_b, _round_up(batch, 8))
    block_b = max(8, block_b // 8 * 8)
    # Prefer >=2 grid steps so the "parallel" batch axis shards over v7x's 2 TCs.
    if pl.cdiv(_round_up(batch, 8), block_b) < 2 and block_b >= 16:
        block_b = _round_up(block_b // 2, 8)
    batch_p = _round_up(batch, block_b)

    vmem_est = weight_bytes + block_b * (2 * per_row_io + per_row_tmp)
    vmem_limit = int(min(cap, max(32 << 20, vmem_est + vmem_est // 2)))

    # ---- weight prep: pre-transpose, fuse [W_in^T | W_s^T], split W_c^T ----
    w_in_t = _pad_to(w_in.T, (dim_p, dim_p))                        # linear_in
    w_s_t = _pad_to(w_out[:, dim:].T, (dim_p, dim_p))               # src half of linear_out
    w_cat = jnp.concatenate([w_in_t, w_s_t], axis=1).astype(matmul_dtype)
    w_c_t = _pad_to(w_out[:, :dim].T, (dim_p, dim_p)).astype(matmul_dtype)

    mem_p = _pad_to(memory_bank, (batch_p, src_len_p, dim_p)).astype(matmul_dtype)
    # Padded batch rows get length 0: fully masked, finite fill keeps the
    # softmax NaN-free; their outputs are sliced off below.
    len_p = _pad_to(memory_lengths.astype(jnp.int32).reshape(batch, 1),
                    (batch_p, 1))

    grid = (batch_p // block_b,)
    cparams = pltpu.CompilerParams(
        dimension_semantics=("parallel",),
        vmem_limit_bytes=vmem_limit)
    w_specs = [_weight_spec((dim_p, 2 * dim_p)), _weight_spec((dim_p, dim_p))]
    kernel = functools.partial(
        _ga_kernel_2d if target_l == 1 else _ga_kernel_3d, approx_recip)

    if target_l == 1:
        src_p = _pad_to(source_t[:, 0, :], (batch_p, dim_p)).astype(matmul_dtype)
        attn_h, align = pl.pallas_call(
            kernel, grid=grid,
            in_specs=[
                pl.BlockSpec((block_b, 1), lambda i: (i, 0)),                    # lengths
                pl.BlockSpec((block_b, dim_p), lambda i: (i, 0)),                # source
                pl.BlockSpec((block_b, src_len_p, dim_p), lambda i: (i, 0, 0)),  # memory bank
                *w_specs,
            ],
            out_specs=(
                pl.BlockSpec((block_b, dim_p), lambda i: (i, 0)),
                pl.BlockSpec((block_b, src_len_p), lambda i: (i, 0)),
            ),
            out_shape=(
                jax.ShapeDtypeStruct((batch_p, dim_p), out_dtype),
                jax.ShapeDtypeStruct((batch_p, src_len_p), out_dtype),
            ),
            compiler_params=cparams,
        )(len_p, src_p, mem_p, w_cat, w_c_t)
        return attn_h[:batch, :dim], align[:batch, :src_len]   # torch .squeeze(1)

    src_p = _pad_to(source_t, (batch_p, target_l, dim_p)).astype(matmul_dtype)
    attn_h, align = pl.pallas_call(
        kernel, grid=grid,
        in_specs=[
            pl.BlockSpec((block_b, 1), lambda i: (i, 0)),
            pl.BlockSpec((block_b, target_l, dim_p), lambda i: (i, 0, 0)),
            pl.BlockSpec((block_b, src_len_p, dim_p), lambda i: (i, 0, 0)),
            *w_specs,
        ],
        out_specs=(
            pl.BlockSpec((block_b, target_l, dim_p), lambda i: (i, 0, 0)),
            pl.BlockSpec((block_b, target_l, src_len_p), lambda i: (i, 0, 0)),
        ),
        out_shape=(
            jax.ShapeDtypeStruct((batch_p, target_l, dim_p), out_dtype),
            jax.ShapeDtypeStruct((batch_p, target_l, src_len_p), out_dtype),
        ),
        compiler_params=cparams,
    )(len_p, src_p, mem_p, w_cat, w_c_t)
    return attn_h[:batch, :, :dim], align[:batch, :, :src_len]


def _reference(source, memory_bank, memory_lengths, w_in, w_out):
    src_t = jnp.transpose(source, (1, 0, 2))
    h_t = src_t @ w_in.T
    align = jnp.einsum('btd,bsd->bts', h_t, memory_bank)
    mask = (jnp.arange(memory_bank.shape[1])[None, None, :]
            < memory_lengths[:, None, None])
    align = jnp.where(mask, align, -jnp.inf)
    av = jax.nn.softmax(align, axis=-1)
    c = jnp.einsum('bts,bsd->btd', av, memory_bank)
    concat = jnp.concatenate([c, src_t], axis=-1)
    attn_h = jnp.tanh(concat @ w_out.T)
    if source.shape[0] == 1:
        return attn_h[:, 0], av[:, 0]
    return attn_h, av


if __name__ == "__main__":
    batch, src_len, dim = 4, 24, 32

    key = jax.random.PRNGKey(0)
    k1, k2, k3, k4, k5 = jax.random.split(key, 5)

    # Parameters (nn.Linear(dim, dim, bias=False) / nn.Linear(2*dim, dim, bias=False)).
    w_in = jax.random.uniform(k1, (dim, dim), jnp.float32, -0.1, 0.1)
    w_out = jax.random.uniform(k2, (dim, 2 * dim), jnp.float32, -0.1, 0.1)

    # Inputs (source in the PyTorch convention [target_l, batch, dim]).
    source = jax.random.normal(k3, (1, batch, dim), jnp.float32)
    memory_bank = jax.random.normal(k4, (batch, src_len, dim), jnp.float32)
    memory_lengths = jnp.array([src_len, 17, 9, 3], dtype=jnp.int32)

    ref_h, ref_a = _reference(source, memory_bank, memory_lengths, w_in, w_out)

    # target_l == 1, f32 path: exact check against the reference.
    attn_h, align = global_attention(source, memory_bank, memory_lengths, w_in, w_out)
    attn_h, align = jax.block_until_ready((attn_h, align))
    assert np.allclose(np.asarray(attn_h), np.asarray(ref_h), atol=1e-5, rtol=1e-5)
    assert np.allclose(np.asarray(align), np.asarray(ref_a), atol=1e-5, rtol=1e-5)

    # target_l == 1, bf16 MXU path: f32 accumulation + f32 softmax, loose check.
    attn_h_bf, align_bf = global_attention(source, memory_bank, memory_lengths,
                                           w_in, w_out, matmul_dtype=jnp.bfloat16)
    attn_h_bf, align_bf = jax.block_until_ready((attn_h_bf, align_bf))
    assert np.allclose(np.asarray(attn_h_bf), np.asarray(ref_h), atol=1e-1, rtol=1e-1)
    assert np.allclose(np.asarray(align_bf), np.asarray(ref_a), atol=1e-1, rtol=1e-1)

    # target_l > 1 general path (3-D kernel), f32 exact check.
    source3 = jax.random.normal(k5, (3, batch, dim), jnp.float32)
    ref_h3, ref_a3 = _reference(source3, memory_bank, memory_lengths, w_in, w_out)
    attn_h3, align3 = global_attention(source3, memory_bank, memory_lengths, w_in, w_out)
    attn_h3, align3 = jax.block_until_ready((attn_h3, align3))
    assert np.allclose(np.asarray(attn_h3), np.asarray(ref_h3), atol=1e-5, rtol=1e-5)
    assert np.allclose(np.asarray(align3), np.asarray(ref_a3), atol=1e-5, rtol=1e-5)

    print("KERNEL_OK")
</pallas_src>

<mosaic_0001>
module attributes {stable_mosaic.version = 11 : i64} {
  func.func @_ga_kernel_2d(%arg0: i32, %arg1: memref<8x1xi32, #tpu.memory_space<vmem>>, %arg2: memref<8x128xf32, #tpu.memory_space<vmem>>, %arg3: memref<8x128x128xf32, #tpu.memory_space<vmem>>, %arg4: memref<128x256xf32, #tpu.memory_space<vmem>>, %arg5: memref<128x128xf32, #tpu.memory_space<vmem>>, %arg6: memref<8x128xf32, #tpu.memory_space<vmem>>, %arg7: memref<8x128xf32, #tpu.memory_space<vmem>>) attributes {dimension_semantics = [#tpu.dimension_semantics<parallel>], iteration_bounds = array<i64: 1>, scalar_prefetch = 0 : i64, scratch_operands = 0 : i64, tpu.core_type = #tpu.core_type<tc>, window_params = [{transform_indices = @transform_0, window_bounds = array<i64: 8, 1>}, {transform_indices = @transform_1, window_bounds = array<i64: 8, 128>}, {transform_indices = @transform_2, window_bounds = array<i64: 8, 128, 128>}, {pipeline_mode = #tpu.pipeline_mode<synchronous>, transform_indices = @transform_3, window_bounds = array<i64: 128, 256>}, {pipeline_mode = #tpu.pipeline_mode<synchronous>, transform_indices = @transform_4, window_bounds = array<i64: 128, 128>}, {transform_indices = @transform_5, window_bounds = array<i64: 8, 128>}, {transform_indices = @transform_6, window_bounds = array<i64: 8, 128>}]} {
    %c0 = arith.constant 0 : index
    %c0_0 = arith.constant 0 : index
    %0 = vector.load %arg2[%c0, %c0_0] : memref<8x128xf32, #tpu.memory_space<vmem>>, vector<8x128xf32>
    %c0_1 = arith.constant 0 : index
    %c0_2 = arith.constant 0 : index
    %c0_3 = arith.constant 0 : index
    %1 = vector.load %arg3[%c0_1, %c0_2, %c0_3] : memref<8x128x128xf32, #tpu.memory_space<vmem>>, vector<8x128x128xf32>
    %c0_4 = arith.constant 0 : index
    %c0_5 = arith.constant 0 : index
    %2 = vector.load %arg4[%c0_4, %c0_5] : memref<128x256xf32, #tpu.memory_space<vmem>>, vector<128x256xf32>
    %cst = arith.constant dense<0.000000e+00> : vector<8x256xf32>
    %3 = tpu.matmul %0, %2, %cst {dimension_numbers = #tpu.dot_dimension_numbers<[1], [0], [0], [1], [0, 0, 1, 1], [], []>} : vector<8x128xf32>, vector<128x256xf32>, vector<8x256xf32> -> vector<8x256xf32>
    %4 = vector.extract_strided_slice %3 {offsets = [0, 0], sizes = [8, 128], strides = [1, 1]} : vector<8x256xf32> to vector<8x128xf32>
    %5 = vector.extract_strided_slice %3 {offsets = [0, 128], sizes = [8, 128], strides = [1, 1]} : vector<8x256xf32> to vector<8x128xf32>
    %6 = vector.shape_cast %4 : vector<8x128xf32> to vector<8x1x128xf32>
    "tpu.trace_start"() <{level = 10 : i32, message = "btd,bsd->bts"}> : () -> ()
    %cst_6 = arith.constant dense<0.000000e+00> : vector<8x1x128xf32>
    %7 = tpu.matmul %6, %1, %cst_6 {dimension_numbers = #tpu.dot_dimension_numbers<[2], [2], [1], [1], [0, 0, 0, 1, 1, 1], [0], [0]>} : vector<8x1x128xf32>, vector<8x128x128xf32>, vector<8x1x128xf32> -> vector<8x1x128xf32>
    "tpu.trace_stop"() : () -> ()
    %8 = vector.shape_cast %7 : vector<8x1x128xf32> to vector<8x128xf32>
    %c0_7 = arith.constant 0 : index
    %c0_8 = arith.constant 0 : index
    %9 = vector.load %arg1[%c0_7, %c0_8] : memref<8x1xi32, #tpu.memory_space<vmem>>, vector<8x1xi32>
    %10 = tpu.iota {dimensions = array<i32: 1>} : vector<8x128xi32>
    %11 = vector.broadcast %9 : vector<8x1xi32> to vector<8x128xi32>
    %12 = arith.cmpi slt, %10, %11 : vector<8x128xi32>
    %cst_9 = arith.constant -1.000000e+30 : f32
    %13 = vector.broadcast %cst_9 : f32 to vector<8x128xf32>
    %14 = arith.select %12, %8, %13 : vector<8x128xi1>, vector<8x128xf32>
    %cst_10 = arith.constant dense<0xFF800000> : vector<8xf32>
    %15 = vector.multi_reduction <maximumf>, %14, %cst_10 [1] : vector<8x128xf32> to vector<8xf32>
    %16 = vector.shape_cast %15 : vector<8xf32> to vector<8x1xf32>
    %17 = vector.broadcast %16 : vector<8x1xf32> to vector<8x128xf32>
    %18 = arith.subf %14, %17 : vector<8x128xf32>
    %19 = math.exp %18 : vector<8x128xf32>
    %cst_11 = arith.constant dense<0.000000e+00> : vector<8xf32>
    %20 = vector.multi_reduction <add>, %19, %cst_11 [1] : vector<8x128xf32> to vector<8xf32>
    %21 = vector.shape_cast %20 : vector<8xf32> to vector<8x1xf32>
    %22 = vector.broadcast %21 : vector<8x1xf32> to vector<8x128xf32>
    %23 = arith.divf %19, %22 : vector<8x128xf32>
    %24 = vector.shape_cast %23 : vector<8x128xf32> to vector<8x1x128xf32>
    "tpu.trace_start"() <{level = 10 : i32, message = "bts,bsd->btd"}> : () -> ()
    %cst_12 = arith.constant dense<0.000000e+00> : vector<8x1x128xf32>
    %25 = tpu.matmul %24, %1, %cst_12 {dimension_numbers = #tpu.dot_dimension_numbers<[2], [1], [1], [2], [0, 0, 0, 1, 1, 2], [0], [0]>} : vector<8x1x128xf32>, vector<8x128x128xf32>, vector<8x1x128xf32> -> vector<8x1x128xf32>
    "tpu.trace_stop"() : () -> ()
    %26 = vector.shape_cast %25 : vector<8x1x128xf32> to vector<8x128xf32>
    %c0_13 = arith.constant 0 : index
    %c0_14 = arith.constant 0 : index
    %27 = vector.load %arg5[%c0_13, %c0_14] : memref<128x128xf32, #tpu.memory_space<vmem>>, vector<128x128xf32>
    %cst_15 = arith.constant dense<0.000000e+00> : vector<8x128xf32>
    %28 = tpu.matmul %26, %27, %cst_15 {dimension_numbers = #tpu.dot_dimension_numbers<[1], [0], [0], [1], [0, 0, 1, 1], [], []>} : vector<8x128xf32>, vector<128x128xf32>, vector<8x128xf32> -> vector<8x128xf32>
    %29 = arith.addf %28, %5 : vector<8x128xf32>
    %30 = math.tanh %29 : vector<8x128xf32>
    %c0_16 = arith.constant 0 : index
    %c0_17 = arith.constant 0 : index
    %31 = vector.load %arg6[%c0_16, %c0_17] : memref<8x128xf32, #tpu.memory_space<vmem>>, vector<8x128xf32>
    tpu.vector_store %arg6[%c0_16, %c0_17], %30 {strides = array<i32>} : memref<8x128xf32, #tpu.memory_space<vmem>>, vector<8x128xf32>,
    %c0_18 = arith.constant 0 : index
    %c0_19 = arith.constant 0 : index
    %32 = vector.load %arg7[%c0_18, %c0_19] : memref<8x128xf32, #tpu.memory_space<vmem>>, vector<8x128xf32>
    tpu.vector_store %arg7[%c0_18, %c0_19], %23 {strides = array<i32>} : memref<8x128xf32, #tpu.memory_space<vmem>>, vector<8x128xf32>,
    return
  }
  func.func @transform_0(%arg0: i32) -> (i32, i32) {
    %c0_i32 = arith.constant 0 : i32
    %c0_i32_0 = arith.constant 0 : i32
    return %arg0, %c0_i32 : i32, i32
  }
  func.func @transform_1(%arg0: i32) -> (i32, i32) {
    %c0_i32 = arith.constant 0 : i32
    %c0_i32_0 = arith.constant 0 : i32
    return %arg0, %c0_i32 : i32, i32
  }
  func.func @transform_2(%arg0: i32) -> (i32, i32, i32) {
    %c0_i32 = arith.constant 0 : i32
    %c0_i32_0 = arith.constant 0 : i32
    %c0_i32_1 = arith.constant 0 : i32
    return %arg0, %c0_i32, %c0_i32_0 : i32, i32, i32
  }
  func.func @transform_3(%arg0: i32) -> (i32, i32) {
    %c0_i32 = arith.constant 0 : i32
    %c0_i32_0 = arith.constant 0 : i32
    %c0_i32_1 = arith.constant 0 : i32
    return %c0_i32, %c0_i32_0 : i32, i32
  }
  func.func @transform_4(%arg0: i32) -> (i32, i32) {
    %c0_i32 = arith.constant 0 : i32
    %c0_i32_0 = arith.constant 0 : i32
    %c0_i32_1 = arith.constant 0 : i32
    return %c0_i32, %c0_i32_0 : i32, i32
  }
  func.func @transform_5(%arg0: i32) -> (i32, i32) {
    %c0_i32 = arith.constant 0 : i32
    %c0_i32_0 = arith.constant 0 : i32
    return %arg0, %c0_i32 : i32, i32
  }
  func.func @transform_6(%arg0: i32) -> (i32, i32) {
    %c0_i32 = arith.constant 0 : i32
    %c0_i32_0 = arith.constant 0 : i32
    return %arg0, %c0_i32 : i32, i32
  }
}

</mosaic_0001>

<bundles_post_ra>
// kernel: tpu_custom_call.1
= control target key start
LH: loop header
LB: loop body
LE: loop exit
PB: predicated region body
PF: predicated region fallthrough
CT: control target
= control target key end

     0   :  { %12 = vsyncpa [#allocation3], 0  ;;  %s3791_s0 = inlined_call_operand.vmem [shape: s32[8,1], index: 0, kind: input, shape index: {}]   ;;  %s3792_s1 = inlined_call_operand.vmem [shape: f32[8,128], index: 1, kind: input, shape index: {}]   ;;  %s3793_s2 = inlined_call_operand.hbm [shape: f32[8,128,128], index: 2, kind: input, shape index: {}]   ;;  %s3794_s3 = inlined_call_operand.hbm [shape: f32[128,256], index: 3, kind: input, shape index: {}]   ;;  %s3795_s4 = inlined_call_operand.hbm [shape: f32[128,128], index: 4, kind: input, shape index: {}]   ;;  %s3796_s5 = inlined_call_operand.hbm [shape: f32[8,128], index: 5, kind: output, shape index: {0}]   ;;  %s3797_s6 = inlined_call_operand.hbm [shape: f32[8,128], index: 6, kind: output, shape index: {1}]  }
   0x1   :  { %13 = vsyncpa [#allocation6], 0 }
   0x2   :  { %14 = vsyncpa [#allocation4], 0 }
   0x3   :  { %15 = vsyncpa [#allocation10], 0  ;;  %s3185_s21 = smov [#allocation5]   ;;  %s3067_s25 = scalar_lea.hbm %s3794_s3, 4096 }
   0x4   :  { %s37_s22 = sshll.u32 %s3185_s21, 4  ;;  %p3068_p0 = scmp.ne.s32.totalorder %s3794_s3, %s3067_s25  ;;  %s38_s22 = int_to_ptr.vmem [resolvable:$true] %s37_s22 }
   0x5   :  { %p3071_p1 = scmp.lt.u32.totalorder %s3067_s25, %s3794_s3 }
   0x7   :  { %p3073_p2 = pnand %p3071_p1, %p3068_p0 }
   0x9   :  { %3076 = shalt.err (!%p3073_p2)
}
   0xa   :  { %s3077_s30 = scalar_lea.vmem %s38_s22, 4096  ;;  %p3082_p4 = scmp.lt.s32.totalorder %s38_s22, %s38_s22 }
   0xb   :  { %p3078_p3 = scmp.ne.s32.totalorder %s38_s22, %s3077_s30  ;;  %p3083_p5 = scmp.lt.s32.totalorder %s3077_s30, %s3077_s30 }
   0xd   :  { %p3084_p6 = por %p3083_p5, %p3082_p4 }
   0xf   :  { %p3085_p7 = pnand %p3084_p6, %p3078_p3 }
  0x11   :  { %3088 = shalt.err (!%p3085_p7)
}
  0x12   :  { %s3186_s7 = smov 256   ;;  %s3187_s8 = smov 16  }
  0x13   :  { %43 = dma.hbm_to_vmem [thread:$0]  %s3794_s3, 4096, %s38_s22, [#allocation6], %s3186_s7, %s3186_s7, %s3187_s8  }
  0x14   :  { %s3188_s11 = smov [#allocation2]   ;;  %s3089_s15 = scalar_lea.hbm %s3793_s2, 16384 }
  0x15   :  { %s25_s12 = sshll.u32 %s3188_s11, 4  ;;  %p3090_p8 = scmp.ne.s32.totalorder %s3793_s2, %s3089_s15  ;;  %s26_s12 = int_to_ptr.vmem [resolvable:$true] %s25_s12 }
  0x16   :  { %p3093_p9 = scmp.lt.u32.totalorder %s3089_s15, %s3793_s2 }
  0x18   :  { %p3095_p10 = pnand %p3093_p9, %p3090_p8 }
  0x1a   :  { %3098 = shalt.err (!%p3095_p10)
}
  0x1b   :  { %s3099_s20 = scalar_lea.vmem %s26_s12, 16384  ;;  %p3104_p12 = scmp.lt.s32.totalorder %s26_s12, %s26_s12 }
  0x1c   :  { %p3100_p11 = scmp.ne.s32.totalorder %s26_s12, %s3099_s20  ;;  %p3105_p13 = scmp.lt.s32.totalorder %s3099_s20, %s3099_s20 }
  0x1e   :  { %p3106_p0 = por %p3105_p13, %p3104_p12 }
  0x20   :  { %p3107_p1 = pnand %p3106_p0, %p3100_p11 }
  0x22   :  { %3110 = shalt.err (!%p3107_p1)
}
  0x23   :  { %s3189_s3 = smov 128   ;;  %s3190_s21 = smov 8  }
  0x24   :  { %31 = dma.hbm_to_vmem [thread:$0]  %s3793_s2, 16384, %s26_s12, [#allocation3], %s3189_s3, %s3189_s3, %s3190_s21  }
  0x25   :  { %s3191_s24 = smov [#allocation7]   ;;  %s3111_s28 = scalar_lea.hbm %s3795_s4, 2048 }
  0x26   :  { %s49_s25 = sshll.u32 %s3191_s24, 4  ;;  %p3112_p2 = scmp.ne.s32.totalorder %s3795_s4, %s3111_s28  ;;  %s50_s25 = int_to_ptr.vmem [resolvable:$true] %s49_s25 }
  0x27   :  { %p3115_p3 = scmp.lt.u32.totalorder %s3111_s28, %s3795_s4 }
  0x29   :  { %p3117_p4 = pnand %p3115_p3, %p3112_p2 }
  0x2b   :  { %3120 = shalt.err (!%p3117_p4)
}
  0x2c   :  { %s3121_s9 = scalar_lea.vmem %s50_s25, 2048  ;;  %p3126_p6 = scmp.lt.s32.totalorder %s50_s25, %s50_s25 }
  0x2d   :  { %p3122_p5 = scmp.ne.s32.totalorder %s50_s25, %s3121_s9  ;;  %p3127_p7 = scmp.lt.s32.totalorder %s3121_s9, %s3121_s9 }
  0x2f   :  { %p3128_p8 = por %p3127_p7, %p3126_p6 }
  0x31   :  { %p3129_p9 = pnand %p3128_p8, %p3122_p5 }
  0x33   :  { %3132 = shalt.err (!%p3129_p9)
}
  0x34   :  { %55 = dma.hbm_to_vmem [thread:$0]  %s3795_s4, 2048, %s50_s25, [#allocation6], %s3189_s3, %s3189_s3, %s3190_s21  }
  0x35   :  { %3177 = dma.done.wait [#allocation3], 16384  }
  0x36   :  { %3178 = vsyncadd [#allocation3], 4294950912 }
  0x37   :  { %3179 = dma.done.wait [#allocation6], 6144  }
  0x38   :  { %3180 = vsyncadd [#allocation6], 4294961152  ;;  %v3799_v0 = vmov 0.0   ;;  %v3193_v1 = vmov 0.0|0.0   ;;  %v195_v2 = vld [vmem:[#allocation5 + $0x8] sm:$0xff]  ;;  %v197_v3 = vld [vmem:[#allocation5 + $0x18] sm:$0xff] }
  0x39   :  { %290 = vmatprep.mubr.f32.mxu0 %v3799_v0  ;;  %2638 = vmatprep.subr.bf16.mxu1 %v3193_v1  ;;  %v194_v4 = vld [vmem:[#allocation5] sm:$0xff]  ;;  %v2606_v5 = vpack.c.bf16 %v197_v3, %v195_v2  ;;  %v196_v6 = vld [vmem:[#allocation5 + $0x10] sm:$0xff]  ;;  %v199_v7 = vld [vmem:[#allocation5 + $0x28] sm:$0xff]  ;;  %vm3194_vm0 = vmmov 0   ;;  %vm931_vm1 = vcmask 1041409   ;;  %vm934_vm2 = vcmask 1042434  }
  0x3a   :  { %v201_v8 = vld [vmem:[#allocation5 + $0x38] sm:$0xff]  ;;  %v2608_v9 = vpack.c.bf16 %v196_v6, %v194_v4  ;;  %v198_v11 = vld [vmem:[#allocation5 + $0x20] sm:$0xff]  ;;  %v200_v12 = vld [vmem:[#allocation5 + $0x30] sm:$0xff]  ;;  %2043 = vmatprep.mubr.msk.f32.mxu1 %vm3194_vm0, %v3799_v0  ;;  %vm937_vm3 = vcmask 1043459   ;;  %vm940_vm4 = vcmask 1044484   ;;  %vm943_vm5 = vcmask 1045509  }
  0x3b   :  { %v2610_v10 = vpack.c.bf16 %v201_v8, %v199_v7  ;;  %v203_v13 = vld [vmem:[#allocation5 + $0x48] sm:$0xff]  ;;  %2607 = vmatprep.subr.bf16.mxu0 %v2606_v5  ;;  %v205_v14 = vld [vmem:[#allocation5 + $0x58] sm:$0xff]  ;;  %v2612_v15 = vpack.c.bf16 %v200_v12, %v198_v11  ;;  %v202_v17 = vld [vmem:[#allocation5 + $0x40] sm:$0xff]  ;;  %vm946_vm6 = vcmask 1046534   ;;  %vm949_vm7 = vcmask 1047559  }
  0x3c   :  { %2609 = vmatpush1.bf16.msra.mxu0 %v2608_v9  ;;  %v2614_v16 = vpack.c.bf16 %v205_v14, %v203_v13  ;;  %v204_v18 = vld [vmem:[#allocation5 + $0x50] sm:$0xff]  ;;  %v207_v19 = vld [vmem:[#allocation5 + $0x68] sm:$0xff]  ;;  %v209_v20 = vld [vmem:[#allocation5 + $0x78] sm:$0xff] }
  0x3d   :  { %2611 = vmatprep.subr.bf16.mxu0 %v2610_v10  ;;  %v2616_v21 = vpack.c.bf16 %v204_v18, %v202_v17  ;;  %v2618_v22 = vpack.c.bf16 %v209_v20, %v207_v19  ;;  %v206_v23 = vld [vmem:[#allocation5 + $0x60] sm:$0xff]  ;;  %v208_v24 = vld [vmem:[#allocation5 + $0x70] sm:$0xff]  ;;  %v211_v25 = vld [vmem:[#allocation5 + $0x88] sm:$0xff] }
  0x3e   :  { %v213_v26 = vld [vmem:[#allocation5 + $0x98] sm:$0xff]  ;;  %v66_v27 = vld [vmem:[#allocation2] sm:$0xff]  ;;  %v67_v28 = vld [vmem:[#allocation2 + $0x8] sm:$0xff]  ;;  %v2620_v29 = vpack.c.bf16 %v208_v24, %v206_v23 }
  0x3f   :  { %v3272_v30 = vpack.c.bf16 %v67_v28, %v66_v27  ;;  %v2622_v31 = vpack.c.bf16 %v213_v26, %v211_v25  ;;  %v210_v32 = vld [vmem:[#allocation5 + $0x80] sm:$0xff]  ;;  %v212_v33 = vld [vmem:[#allocation5 + $0x90] sm:$0xff]  ;;  %v215_v34 = vld [vmem:[#allocation5 + $0xa8] sm:$0xff] }
  0x40   :  { %2613 = vmatpush1.bf16.msra.mxu0 %v2612_v15  ;;  %v217_v35 = vld [vmem:[#allocation5 + $0xb8] sm:$0xff]  ;;  %v68_v36 = vld [vmem:[#allocation2 + $0x10] sm:$0xff]  ;;  %v2624_v38 = vpack.c.bf16 %v212_v33, %v210_v32  ;;  %v214_v40 = vld [vmem:[#allocation5 + $0xa0] sm:$0xff] }
  0x41   :  { %2615 = vmatprep.subr.bf16.mxu0 %v2614_v16  ;;  %2640 = vmatpush3.bf16.xpose.msra.mxu1 %v3272_v30  ;;  %v69_v37 = vld [vmem:[#allocation2 + $0x18] sm:$0xff]  ;;  %v2626_v39 = vpack.c.bf16 %v217_v35, %v215_v34  ;;  %v216_v41 = vld [vmem:[#allocation5 + $0xb0] sm:$0xff]  ;;  %v219_v42 = vld [vmem:[#allocation5 + $0xc8] sm:$0xff] }
  0x42   :  { %2641 = vmatprep.subr.bf16.mxu1 %v3193_v1  ;;  %v221_v43 = vld [vmem:[#allocation5 + $0xd8] sm:$0xff]  ;;  %v3276_v44 = vpack.c.bf16 %v69_v37, %v68_v36  ;;  %v2628_v45 = vpack.c.bf16 %v216_v41, %v214_v40  ;;  %v218_v47 = vld [vmem:[#allocation5 + $0xc0] sm:$0xff]  ;;  %v220_v48 = vld [vmem:[#allocation5 + $0xd0] sm:$0xff]  ;;  %v3798_v40 = vlaneseq }
  0x43   :  { %v2630_v46 = vpack.c.bf16 %v221_v43, %v219_v42  ;;  %v223_v49 = vld [vmem:[#allocation5 + $0xe8] sm:$0xff]  ;;  %v225_v50 = vld [vmem:[#allocation5 + $0xf8] sm:$0xff]  ;;  %v70_v51 = vld [vmem:[#allocation2 + $0x20] sm:$0xff]  ;;  %v2632_v53 = vpack.c.bf16 %v220_v48, %v218_v47 }
  0x44   :  { %2617 = vmatpush1.bf16.msra.mxu0 %v2616_v21  ;;  %v71_v52 = vld [vmem:[#allocation2 + $0x28] sm:$0xff]  ;;  %v2634_v54 = vpack.c.bf16 %v225_v50, %v223_v49  ;;  %v222_v55 = vld [vmem:[#allocation5 + $0xe0] sm:$0xff]  ;;  %v224_v56 = vld [vmem:[#allocation5 + $0xf0] sm:$0xff]  ;;  %v303_v42 = vshrl.u32 %v3798_v40, 7 }
  0x45   :  { %2619 = vmatprep.subr.bf16.mxu0 %v2618_v22  ;;  %v3280_v57 = vpack.c.bf16 %v71_v52, %v70_v51  ;;  %v2636_v58 = vpack.c.bf16 %v224_v56, %v222_v55  ;;  %v72_v59 = vld [vmem:[#allocation2 + $0x30] sm:$0xff]  ;;  %v73_v60 = vld [vmem:[#allocation2 + $0x38] sm:$0xff]  ;;  %v82_v62 = vld [vmem:[#allocation2 + $0x80] sm:$0xff] }
  0x46   :  { %v65_v61 = vld [vmem:[%s3792_s1] sm:$0xff]  ;;  %v83_v63 = vld [vmem:[#allocation2 + $0x88] sm:$0xff]  ;;  %v3288_v2 = vpack.c.bf16 %v73_v60, %v72_v59  ;;  %v74_v4 = vld [vmem:[#allocation2 + $0x40] sm:$0xff] }
  0x47   :  { %v3290_v3 = vpack.c.bf16 %v83_v63, %v82_v62  ;;  %v75_v5 = vld [vmem:[#allocation2 + $0x48] sm:$0xff]  ;;  %v84_v6 = vld [vmem:[#allocation2 + $0x90] sm:$0xff]  ;;  %v85_v7 = vld [vmem:[#allocation2 + $0x98] sm:$0xff] }
  0x48   :  { %2621 = vmatpush1.bf16.msra.mxu0 %v2620_v29  ;;  %v3296_v8 = vpack.c.bf16 %v75_v5, %v74_v4  ;;  %v3298_v9 = vpack.c.bf16 %v85_v7, %v84_v6  ;;  %v76_v10 = vld [vmem:[#allocation2 + $0x50] sm:$0xff]  ;;  %v77_v11 = vld [vmem:[#allocation2 + $0x58] sm:$0xff]  ;;  %v86_v12 = vld [vmem:[#allocation2 + $0xa0] sm:$0xff] }
  0x49   :  { %2623 = vmatprep.subr.bf16.mxu0 %v2622_v31  ;;  %2643 = vmatpush3.bf16.xpose.msra.mxu1 %v3276_v44  ;;  %v87_v13 = vld [vmem:[#allocation2 + $0xa8] sm:$0xff]  ;;  %v3304_v14 = vpack.c.bf16 %v77_v11, %v76_v10  ;;  %v78_v16 = vld [vmem:[#allocation2 + $0x60] sm:$0xff]  ;;  %v88_v18 = vld [vmem:[#allocation2 + $0xb0] sm:$0xff] }
  0x4a   :  { %2644 = vmatprep.subr.bf16.mxu1 %v3193_v1  ;;  %v3306_v15 = vpack.c.bf16 %v87_v13, %v86_v12  ;;  %v79_v17 = vld [vmem:[#allocation2 + $0x68] sm:$0xff]  ;;  %v89_v19 = vld [vmem:[#allocation2 + $0xb8] sm:$0xff]  ;;  %v80_v22 = vld [vmem:[#allocation2 + $0x70] sm:$0xff] }
  0x4b   :  { %v3312_v20 = vpack.c.bf16 %v79_v17, %v78_v16  ;;  %v3314_v21 = vpack.c.bf16 %v89_v19, %v88_v18  ;;  %v81_v23 = vld [vmem:[#allocation2 + $0x78] sm:$0xff]  ;;  %v90_v24 = vld [vmem:[#allocation2 + $0xc0] sm:$0xff]  ;;  %v91_v25 = vld [vmem:[#allocation2 + $0xc8] sm:$0xff] }
  0x4c   :  { %2625 = vmatpush1.bf16.msra.mxu0 %v2624_v38  ;;  %v3320_v26 = vpack.c.bf16 %v81_v23, %v80_v22  ;;  %v3322_v27 = vpack.c.bf16 %v91_v25, %v90_v24  ;;  %v92_v28 = vld [vmem:[#allocation2 + $0xd0] sm:$0xff]  ;;  %v93_v29 = vld [vmem:[#allocation2 + $0xd8] sm:$0xff]  ;;  %v94_v32 = vld [vmem:[#allocation2 + $0xe0] sm:$0xff]  ;;  %v3195_v38 = vmov 1966171168  }
  0x4d   :  { %2627 = vmatprep.subr.bf16.mxu0 %v2626_v39  ;;  %v3328_v31 = vpack.c.bf16 %v93_v29, %v92_v28  ;;  %v95_v33 = vld [vmem:[#allocation2 + $0xe8] sm:$0xff]  ;;  %v96_v35 = vld [vmem:[#allocation2 + $0xf0] sm:$0xff]  ;;  %v97_v36 = vld [vmem:[#allocation2 + $0xf8] sm:$0xff]  ;;  %v300_v39 = vunpack.c.l.s4 %v3195_v38 }
  0x4e   :  { %v3332_v34 = vpack.c.bf16 %v95_v33, %v94_v32  ;;  %v3336_v37 = vpack.c.bf16 %v97_v36, %v96_v35  ;;  %v114_v50 = vld [vmem:[#allocation2 + $0x180] sm:$0xff]  ;;  %v115_v51 = vld [vmem:[#allocation2 + $0x188] sm:$0xff]  ;;  %v101_v59 = vld [vmem:[#allocation2 + $0x118] sm:$0xff] }
  0x4f   :  { %v301_v41 = vunpack.c.0.s8 %v300_v39  ;;  %v3358_v55 = vpack.c.bf16 %v115_v51, %v114_v50  ;;  %v116_v60 = vld [vmem:[#allocation2 + $0x190] sm:$0xff]  ;;  %v102_v4 = vld [vmem:[#allocation2 + $0x120] sm:$0xff]  ;;  %v103_v5 = vld [vmem:[#allocation2 + $0x128] sm:$0xff] }
  0x50   :  { %2629 = vmatpush1.bf16.msra.mxu0 %v2628_v45  ;;  %v98_v45 = vld [vmem:[#allocation2 + $0x100] sm:$0xff]  ;;  %v119_v7 = vld [vmem:[#allocation2 + $0x1a8] sm:$0xff]  ;;  %v3381_v10 = vpack.c.bf16 %v103_v5, %v102_v4  ;;  %v104_v12 = vld [vmem:[#allocation2 + $0x130] sm:$0xff] }
  0x51   :  { %2631 = vmatprep.subr.bf16.mxu0 %v2630_v46  ;;  %2646 = vmatpush3.bf16.xpose.msra.mxu1 %v3280_v57  ;;  %v3345_v43 = vsub.s32 %v301_v41, %v303_v42  ;;  %v99_v46 = vld [vmem:[#allocation2 + $0x108] sm:$0xff]  ;;  %v118_v6 = vld [vmem:[#allocation2 + $0x1a0] sm:$0xff]  ;;  %v105_v13 = vld [vmem:[#allocation2 + $0x138] sm:$0xff] }
  0x52   :  { %2647 = vmatprep.subr.bf16.mxu1 %v3193_v1  ;;  %v3353_v52 = vpack.c.bf16 %v99_v46, %v98_v45  ;;  %v3383_v11 = vpack.c.bf16 %v119_v7, %v118_v6  ;;  %v120_v16 = vld [vmem:[#allocation2 + $0x1b0] sm:$0xff]  ;;  %v121_v17 = vld [vmem:[#allocation2 + $0x1b8] sm:$0xff]  ;;  %v3389_v18 = vpack.c.bf16 %v105_v13, %v104_v12  ;;  %v106_v22 = vld [vmem:[#allocation2 + $0x140] sm:$0xff] }
  0x53   :  { %v3391_v19 = vpack.c.bf16 %v121_v17, %v120_v16  ;;  %v107_v23 = vld [vmem:[#allocation2 + $0x148] sm:$0xff]  ;;  %v122_v24 = vld [vmem:[#allocation2 + $0x1c0] sm:$0xff]  ;;  %v108_v32 = vld [vmem:[#allocation2 + $0x150] sm:$0xff] }
  0x54   :  { %2633 = vmatpush1.bf16.msra.mxu0 %v2632_v53  ;;  %v123_v25 = vld [vmem:[#allocation2 + $0x1c8] sm:$0xff]  ;;  %v3397_v28 = vpack.c.bf16 %v107_v23, %v106_v22  ;;  %v109_v33 = vld [vmem:[#allocation2 + $0x158] sm:$0xff]  ;;  %v124_v35 = vld [vmem:[#allocation2 + $0x1d0] sm:$0xff] }
  0x55   :  { %2635 = vmatprep.subr.bf16.mxu0 %v2634_v54  ;;  %v3399_v29 = vpack.c.bf16 %v123_v25, %v122_v24  ;;  %v125_v36 = vld [vmem:[#allocation2 + $0x1d8] sm:$0xff]  ;;  %v3405_v38 = vpack.c.bf16 %v109_v33, %v108_v32  ;;  %v110_v41 = vld [vmem:[#allocation2 + $0x160] sm:$0xff]  ;;  %v111_v42 = vld [vmem:[#allocation2 + $0x168] sm:$0xff] }
  0x56   :  { %v3407_v39 = vpack.c.bf16 %v125_v36, %v124_v35  ;;  %v126_v45 = vld [vmem:[#allocation2 + $0x1e0] sm:$0xff]  ;;  %v127_v46 = vld [vmem:[#allocation2 + $0x1e8] sm:$0xff]  ;;  %v112_v51 = vld [vmem:[#allocation2 + $0x170] sm:$0xff] }
  0x57   :  { %v3415_v50 = vpack.c.bf16 %v127_v46, %v126_v45  ;;  %v130_v4 = vld [vmem:[#allocation2 + $0x200] sm:$0xff]  ;;  %v131_v5 = vld [vmem:[#allocation2 + $0x208] sm:$0xff]  ;;  %v132_v22 = vld [vmem:[#allocation2 + $0x210] sm:$0xff] }
  0x58   :  { %2637 = vmatpush1.bf16.msra.mxu0 %v2636_v58  ;;  %v100_v58 = vld [vmem:[#allocation2 + $0x110] sm:$0xff]  ;;  %v146_v6 = vld [vmem:[#allocation2 + $0x280] sm:$0xff]  ;;  %v147_v7 = vld [vmem:[#allocation2 + $0x288] sm:$0xff]  ;;  %v3429_v12 = vpack.c.bf16 %v131_v5, %v130_v4 }
  0x59   :  { %2662 = vmatprep.subr.bf16.mxu0 %v3193_v1  ;;  %2649 = vmatpush3.bf16.xpose.msra.mxu1 %v3288_v2  ;;  %v3373_v62 = vpack.c.bf16 %v101_v59, %v100_v58  ;;  %v128_v58 = vld [vmem:[#allocation2 + $0x1f0] sm:$0xff]  ;;  %v129_v59 = vld [vmem:[#allocation2 + $0x1f8] sm:$0xff]  ;;  %v3433_v16 = vpack.c.bf16 %v147_v7, %v146_v6  ;;  %v134_v32 = vld [vmem:[#allocation2 + $0x220] sm:$0xff] }
  0x5a   :  { %2650 = vmatprep.subr.bf16.mxu1 %v3193_v1  ;;  %v133_v23 = vld [vmem:[#allocation2 + $0x218] sm:$0xff]  ;;  %v135_v33 = vld [vmem:[#allocation2 + $0x228] sm:$0xff]  ;;  %v150_v35 = vld [vmem:[#allocation2 + $0x2a0] sm:$0xff] }
  0x5b   :  { %291 = vmatmul.mubr.f32.vlgmr.msra.gmra.mrb[0].mxu0 %v65_v61  ;;  %v117_v61 = vld [vmem:[#allocation2 + $0x198] sm:$0xff]  ;;  %v151_v36 = vld [vmem:[#allocation2 + $0x2a8] sm:$0xff]  ;;  %v136_v45 = vld [vmem:[#allocation2 + $0x230] sm:$0xff] }
  0x5c   :  { %2078 = vmatprep.mubr.msk.f32.mxu0 %vm3194_vm0, %v3799_v0  ;;  %v3375_v63 = vpack.c.bf16 %v117_v61, %v116_v60  ;;  %v3423_v61 = vpack.c.bf16 %v129_v59, %v128_v58  ;;  %v149_v24 = vld [vmem:[#allocation2 + $0x298] sm:$0xff]  ;;  %v138_v4 = vld [vmem:[#allocation2 + $0x240] sm:$0xff]  ;;  %v139_v5 = vld [vmem:[#allocation2 + $0x248] sm:$0xff] }
  0x5d   :  { %v137_v46 = vld [vmem:[#allocation2 + $0x238] sm:$0xff]  ;;  %v154_v6 = vld [vmem:[#allocation2 + $0x2c0] sm:$0xff]  ;;  %v155_v7 = vld [vmem:[#allocation2 + $0x2c8] sm:$0xff] }
  0x5e   :  { %v3461_v58 = vpack.c.bf16 %v137_v46, %v136_v45  ;;  %v158_v45 = vld [vmem:[#allocation2 + $0x2e0] sm:$0xff]  ;;  %v159_v46 = vld [vmem:[#allocation2 + $0x2e8] sm:$0xff] }
  0x61   :  { %2664 = vmatpush3.bf16.xpose.msra.mxu0 %v3290_v3  ;;  %2652 = vmatpush3.bf16.xpose.msra.mxu1 %v3296_v8 }
  0x62   :  { %2665 = vmatprep.subr.bf16.mxu0 %v3193_v1  ;;  %2653 = vmatprep.subr.bf16.mxu1 %v3193_v1 }
  0x69   :  { %2667 = vmatpush3.bf16.xpose.msra.mxu0 %v3298_v9  ;;  %2655 = vmatpush3.bf16.xpose.msra.mxu1 %v3304_v14 }
  0x6a   :  { %2668 = vmatprep.subr.bf16.mxu0 %v3193_v1  ;;  %2656 = vmatprep.subr.bf16.mxu1 %v3193_v1 }
  0x71   :  { %2670 = vmatpush3.bf16.xpose.msra.mxu0 %v3306_v15  ;;  %2658 = vmatpush3.bf16.xpose.msra.mxu1 %v3312_v20 }
  0x72   :  { %2671 = vmatprep.subr.bf16.mxu0 %v3193_v1  ;;  %2659 = vmatprep.subr.bf16.mxu1 %v3193_v1 }
  0x79   :  { %2673 = vmatpush3.bf16.xpose.msra.mxu0 %v3314_v21  ;;  %2661 = vmatpush3.bf16.xpose.msra.mxu1 %v3320_v26 }
  0x7a   :  { %2674 = vmatprep.subr.bf16.mxu0 %v3193_v1  ;;  %2686 = vmatprep.subr.bf16.mxu1 %v3193_v1 }
  0x81   :  { %2676 = vmatpush3.bf16.xpose.msra.mxu0 %v3322_v27 }
  0x82   :  { %2677 = vmatprep.subr.bf16.mxu0 %v3193_v1 }
  0x89   :  { %2679 = vmatpush3.bf16.xpose.msra.mxu0 %v3328_v31 }
  0x8a   :  { %2680 = vmatprep.subr.bf16.mxu0 %v3193_v1 }
  0x91   :  { %2682 = vmatpush3.bf16.xpose.msra.mxu0 %v3332_v34 }
  0x92   :  { %2683 = vmatprep.subr.bf16.mxu0 %v3193_v1 }
  0x99   :  { %2685 = vmatpush3.bf16.xpose.msra.mxu0 %v3336_v37 }
  0x9a   :  { %2710 = vmatprep.subr.bf16.mxu0 %v3193_v1 }
 0x12e   :  { %v3347_v47 = vpop.f32.mrb[0].mxu0 }
 0x12f   :  { %v305_v48 = vrot.slane %v3347_v47, %v3345_v43  ;;  %v3351_v49 = vpop.f32.mrb[1].mxu0 }
 0x130   :  { %3813 = vst [vmem:[#allocation15_spill] sm:$0xff] %v3351_v49  ;;  %v182_v49 = vld [vmem:[#allocation2 + $0x3a0] sm:$0xff] }
 0x131   :  { %v313_v53 = vcombine.high %v305_v48, %v305_v48  ;;  %v3356_v54 = vrot.slane %v305_v48, %v3345_v43  ;;  %v3413_v48 = vpack.c.bf16 %v111_v42, %v110_v41  ;;  %v3453_v41 = vpack.c.bf16 %v135_v33, %v134_v32 }
 0x132   :  { %v3455_v42 = vpack.c.bf16 %v151_v36, %v150_v35  ;;  %v142_v35 = vld [vmem:[#allocation2 + $0x260] sm:$0xff]  ;;  %v143_v36 = vld [vmem:[#allocation2 + $0x268] sm:$0xff] }
 0x133   :  { %v3361_v56 = vrot.slane %v313_v53, %v3345_v43  ;;  %2044 = vmatmul.mubr.f32.vlgmr.msra.gmra.mrb[0].mxu1 %v3356_v54  ;;  %v113_v53 = vld [vmem:[#allocation2 + $0x178] sm:$0xff]  ;;  %v343_v13 = vcombine.high %v3356_v54, %v3356_v54  ;;  %v148_v54 = vld [vmem:[#allocation2 + $0x290] sm:$0xff] }
 0x134   :  { %2688 = vmatpush3.bf16.xpose.msra.mxu1 %v3353_v52  ;;  %2113 = vmatprep.mubr.msk.f32.mxu1 %vm3194_vm0, %v3799_v0  ;;  %v3421_v60 = vpack.c.bf16 %v113_v53, %v112_v51  ;;  %v3447_v25 = vpack.c.bf16 %v149_v24, %v148_v54  ;;  %v152_v51 = vld [vmem:[#allocation2 + $0x2b0] sm:$0xff]  ;;  %v153_v53 = vld [vmem:[#allocation2 + $0x2b8] sm:$0xff] }
 0x135   :  { %2079 = vmatmul.mubr.f32.vlgmr.msra.gmra.mrb[2].mxu0 %v3361_v56  ;;  %2689 = vmatprep.subr.bf16.mxu1 %v3193_v1  ;;  %v345_v17 = vcombine.high %v3361_v56, %v3361_v56  ;;  %v3445_v56 = vpack.c.bf16 %v133_v23, %v132_v22  ;;  %v3463_v59 = vpack.c.bf16 %v153_v53, %v152_v51  ;;  %v140_v22 = vld [vmem:[#allocation2 + $0x250] sm:$0xff]  ;;  %v141_v23 = vld [vmem:[#allocation2 + $0x258] sm:$0xff] }
 0x136   :  { %2712 = vmatpush3.bf16.xpose.msra.mxu0 %v3358_v55  ;;  %2148 = vmatprep.mubr.msk.f32.mxu0 %vm3194_vm0, %v3799_v0  ;;  %v156_v54 = vld [vmem:[#allocation2 + $0x2d0] sm:$0xff]  ;;  %v157_v24 = vld [vmem:[#allocation2 + $0x2d8] sm:$0xff]  ;;  %v3477_v32 = vpack.c.bf16 %v141_v23, %v140_v22  ;;  %v3485_v51 = vpack.c.bf16 %v143_v36, %v142_v35  ;;  %v3487_v53 = vpack.c.bf16 %v159_v46, %v158_v45  ;;  %v162_v35 = vld [vmem:[#allocation2 + $0x300] sm:$0xff] }
 0x137   :  { %2713 = vmatprep.subr.bf16.mxu0 %v3193_v1  ;;  %v3479_v33 = vpack.c.bf16 %v157_v24, %v156_v54  ;;  %v161_v22 = vld [vmem:[#allocation2 + $0x2f8] sm:$0xff]  ;;  %v163_v36 = vld [vmem:[#allocation2 + $0x308] sm:$0xff] }
 0x138   :  { %v179_v46 = vld [vmem:[#allocation2 + $0x388] sm:$0xff]  ;;  %v3504_v40 = vpack.c.bf16 %v163_v36, %v162_v35  ;;  %v181_v35 = vld [vmem:[#allocation2 + $0x398] sm:$0xff] }
 0x13a   :  { %3814 = vst [vmem:[#allocation16_spill] sm:$0xff] %v3504_v40 }
 0x13c   :  { %2691 = vmatpush3.bf16.xpose.msra.mxu1 %v3373_v62 }
 0x13d   :  { %2692 = vmatprep.subr.bf16.mxu1 %v3193_v1 }
 0x13e   :  { %2715 = vmatpush3.bf16.xpose.msra.mxu0 %v3375_v63 }
 0x13f   :  { %2716 = vmatprep.subr.bf16.mxu0 %v3193_v1 }
 0x144   :  { %2694 = vmatpush3.bf16.xpose.msra.mxu1 %v3381_v10 }
 0x145   :  { %2695 = vmatprep.subr.bf16.mxu1 %v3193_v1 }
 0x146   :  { %2718 = vmatpush3.bf16.xpose.msra.mxu0 %v3383_v11 }
 0x147   :  { %2719 = vmatprep.subr.bf16.mxu0 %v3193_v1 }
 0x14c   :  { %2697 = vmatpush3.bf16.xpose.msra.mxu1 %v3389_v18 }
 0x14d   :  { %2698 = vmatprep.subr.bf16.mxu1 %v3193_v1 }
 0x14e   :  { %2721 = vmatpush3.bf16.xpose.msra.mxu0 %v3391_v19 }
 0x14f   :  { %2722 = vmatprep.subr.bf16.mxu0 %v3193_v1 }
 0x154   :  { %2700 = vmatpush3.bf16.xpose.msra.mxu1 %v3397_v28 }
 0x155   :  { %2701 = vmatprep.subr.bf16.mxu1 %v3193_v1 }
 0x156   :  { %2724 = vmatpush3.bf16.xpose.msra.mxu0 %v3399_v29 }
 0x157   :  { %2725 = vmatprep.subr.bf16.mxu0 %v3193_v1 }
 0x15c   :  { %2703 = vmatpush3.bf16.xpose.msra.mxu1 %v3405_v38 }
 0x15d   :  { %2704 = vmatprep.subr.bf16.mxu1 %v3193_v1 }
 0x15e   :  { %2727 = vmatpush3.bf16.xpose.msra.mxu0 %v3407_v39 }
 0x15f   :  { %2728 = vmatprep.subr.bf16.mxu0 %v3193_v1 }
 0x164   :  { %2706 = vmatpush3.bf16.xpose.msra.mxu1 %v3413_v48 }
 0x165   :  { %2707 = vmatprep.subr.bf16.mxu1 %v3193_v1 }
 0x166   :  { %2730 = vmatpush3.bf16.xpose.msra.mxu0 %v3415_v50 }
 0x167   :  { %2731 = vmatprep.subr.bf16.mxu0 %v3193_v1 }
 0x16c   :  { %2709 = vmatpush3.bf16.xpose.msra.mxu1 %v3421_v60 }
 0x16d   :  { %2734 = vmatprep.subr.bf16.mxu1 %v3193_v1 }
 0x16e   :  { %2733 = vmatpush3.bf16.xpose.msra.mxu0 %v3423_v61 }
 0x16f   :  { %2758 = vmatprep.subr.bf16.mxu0 %v3193_v1 }
 0x173   :  { %2114 = vmatmul.mubr.f32.vlgmr.msra.gmra.mrb[2].mxu1 %v343_v13  ;;  %v3469_v13 = vpack.c.bf16 %v139_v5, %v138_v4  ;;  %v144_v4 = vld [vmem:[#allocation2 + $0x270] sm:$0xff]  ;;  %v145_v5 = vld [vmem:[#allocation2 + $0x278] sm:$0xff] }
 0x174   :  { %2736 = vmatpush3.bf16.xpose.msra.mxu1 %v3429_v12  ;;  %2183 = vmatprep.mubr.msk.f32.mxu1 %vm3194_vm0, %v3799_v0  ;;  %v3495_v23 = vpack.c.bf16 %v145_v5, %v144_v4 }
 0x175   :  { %2149 = vmatmul.mubr.f32.vlgmr.msra.gmra.mrb[4].mxu0 %v345_v17  ;;  %2737 = vmatprep.subr.bf16.mxu1 %v3193_v1  ;;  %v3471_v17 = vpack.c.bf16 %v155_v7, %v154_v6  ;;  %v298_v6 = vcombine.high %v3347_v47, %v3347_v47  ;;  %v160_v7 = vld [vmem:[#allocation2 + $0x2f0] sm:$0xff]  ;;  %v178_v47 = vld [vmem:[#allocation2 + $0x380] sm:$0xff] }
 0x176   :  { %2760 = vmatpush3.bf16.xpose.msra.mxu0 %v3433_v16  ;;  %2218 = vmatprep.mubr.msk.f32.mxu0 %vm3194_vm0, %v3799_v0  ;;  %v3497_v54 = vpack.c.bf16 %v161_v22, %v160_v7  ;;  %v3509_v5 = vpack.c.bf16 %v179_v46, %v178_v47  ;;  %v164_v7 = vld [vmem:[#allocation2 + $0x310] sm:$0xff]  ;;  %v165_v22 = vld [vmem:[#allocation2 + $0x318] sm:$0xff]  ;;  %v166_v47 = vld [vmem:[#allocation2 + $0x320] sm:$0xff] }
 0x177   :  { %2761 = vmatprep.subr.bf16.mxu0 %v3193_v1  ;;  %v312_v24 = vrot.slane %v298_v6, %v3345_v43  ;;  %v3524_v36 = vpack.c.bf16 %v165_v22, %v164_v7  ;;  %v167_v46 = vld [vmem:[#allocation2 + $0x328] sm:$0xff]  ;;  %v168_v7 = vld [vmem:[#allocation2 + $0x330] sm:$0xff]  ;;  %v169_v22 = vld [vmem:[#allocation2 + $0x338] sm:$0xff] }
 0x178   :  { %3815 = vst [vmem:[#allocation17_spill] sm:$0xff] %v3509_v5 }
 0x179   :  { %v314_v45 = vcombine.high %v312_v24, %v312_v24  ;;  %v3507_v4 = vrot.slane %v312_v24, %v3345_v43  ;;  %v180_v24 = vld [vmem:[#allocation2 + $0x390] sm:$0xff]  ;;  %3816 = vst [vmem:[#allocation18_spill] sm:$0xff] %v3524_v36 }
 0x17b   :  { %v3513_v6 = vrot.slane %v314_v45, %v3345_v43  ;;  %v3526_v45 = vpack.c.bf16 %v181_v35, %v180_v24  ;;  %v184_v24 = vld [vmem:[#allocation2 + $0x3b0] sm:$0xff]  ;;  %v185_v35 = vld [vmem:[#allocation2 + $0x3b8] sm:$0xff] }
 0x17c   :  { %2739 = vmatpush3.bf16.xpose.msra.mxu1 %v3445_v56 }
 0x17d   :  { %2740 = vmatprep.subr.bf16.mxu1 %v3193_v1  ;;  %3817 = vst [vmem:[#allocation19_spill] sm:$0xff] %v3526_v45 }
 0x17e   :  { %2763 = vmatpush3.bf16.xpose.msra.mxu0 %v3447_v25 }
 0x17f   :  { %2764 = vmatprep.subr.bf16.mxu0 %v3193_v1 }
 0x184   :  { %2742 = vmatpush3.bf16.xpose.msra.mxu1 %v3453_v41 }
 0x185   :  { %2743 = vmatprep.subr.bf16.mxu1 %v3193_v1 }
 0x186   :  { %2766 = vmatpush3.bf16.xpose.msra.mxu0 %v3455_v42 }
 0x187   :  { %2767 = vmatprep.subr.bf16.mxu0 %v3193_v1 }
 0x18c   :  { %2745 = vmatpush3.bf16.xpose.msra.mxu1 %v3461_v58 }
 0x18d   :  { %2746 = vmatprep.subr.bf16.mxu1 %v3193_v1 }
 0x18e   :  { %2769 = vmatpush3.bf16.xpose.msra.mxu0 %v3463_v59 }
 0x18f   :  { %2770 = vmatprep.subr.bf16.mxu0 %v3193_v1 }
 0x194   :  { %2748 = vmatpush3.bf16.xpose.msra.mxu1 %v3469_v13 }
 0x195   :  { %2749 = vmatprep.subr.bf16.mxu1 %v3193_v1 }
 0x196   :  { %2772 = vmatpush3.bf16.xpose.msra.mxu0 %v3471_v17 }
 0x197   :  { %2773 = vmatprep.subr.bf16.mxu0 %v3193_v1 }
 0x19c   :  { %2751 = vmatpush3.bf16.xpose.msra.mxu1 %v3477_v32 }
 0x19d   :  { %2752 = vmatprep.subr.bf16.mxu1 %v3193_v1 }
 0x19e   :  { %2775 = vmatpush3.bf16.xpose.msra.mxu0 %v3479_v33 }
 0x19f   :  { %2776 = vmatprep.subr.bf16.mxu0 %v3193_v1 }
 0x1a4   :  { %2754 = vmatpush3.bf16.xpose.msra.mxu1 %v3485_v51 }
 0x1a5   :  { %2755 = vmatprep.subr.bf16.mxu1 %v3193_v1 }
 0x1a6   :  { %2778 = vmatpush3.bf16.xpose.msra.mxu0 %v3487_v53 }
 0x1a7   :  { %2779 = vmatprep.subr.bf16.mxu0 %v3193_v1 }
 0x1ac   :  { %2757 = vmatpush3.bf16.xpose.msra.mxu1 %v3495_v23 }
 0x1ad   :  { %2782 = vmatprep.subr.bf16.mxu1 %v3193_v1 }
 0x1ae   :  { %2781 = vmatpush3.bf16.xpose.msra.mxu0 %v3497_v54 }
 0x1af   :  { %2806 = vmatprep.subr.bf16.mxu0 %v3193_v1 }
 0x1b3   :  { %2184 = vmatmul.mubr.f32.vlgmr.msra.gmra.mrb[4].mxu1 %v3507_v4 }
 0x1b4   :  { %2784 = vmatpush3.bf16.xpose.msra.mxu1 %v3504_v40  ;;  %2253 = vmatprep.mubr.msk.f32.mxu1 %vm3194_vm0, %v3799_v0 }
 0x1b5   :  { %2219 = vmatmul.mubr.f32.vlgmr.msra.gmra.mrb[6].mxu0 %v3513_v6  ;;  %2785 = vmatprep.subr.bf16.mxu1 %v3193_v1 }
 0x1b6   :  { %2808 = vmatpush3.bf16.xpose.msra.mxu0 %v3509_v5  ;;  %2288 = vmatprep.mubr.msk.f32.mxu0 %vm3194_vm0, %v3799_v0  ;;  %v183_v0 = vld [vmem:[#allocation2 + $0x3a8] sm:$0xff]  ;;  %v3532_v5 = vpack.c.bf16 %v167_v46, %v166_v47  ;;  %v3196_v47 = vmov 0  }
 0x1b7   :  { %2809 = vmatprep.subr.bf16.mxu0 %v3193_v1  ;;  %v3534_v40 = vpack.c.bf16 %v183_v0, %v182_v49  ;;  %3060 = vset.pattern.permute.xlu0 %v3196_v47  ;;  %v915_v0 = vld [vmem:[%s3791_s0] sm:$0xff]  ;;  %v170_v49 = vld [vmem:[#allocation2 + $0x340] sm:$0xff]  ;;  %v171_v46 = vld [vmem:[#allocation2 + $0x348] sm:$0xff]  ;;  %s3197_s0 = smov [#allocation9]  }
 0x1b8   :  { %3818 = vst [vmem:[#allocation20_spill] sm:$0xff] %v3532_v5  ;;  %919 = vperm.xlu0 %3060, %v915_v0   ;;  %v172_v47 = vld [vmem:[#allocation2 + $0x350] sm:$0xff]  ;;  %v173_v0 = vld [vmem:[#allocation2 + $0x358] sm:$0xff]  ;;  %s1708_s13 = sshll.u32 %s3197_s0, 4  ;;  %s1709_s13 = int_to_ptr.vmem [resolvable:$true] %s1708_s13 }
 0x1b9   :  { %3819 = vst [vmem:[#allocation21_spill] sm:$0xff] %v3534_v40  ;;  %s3133_s14 = scalar_lea.vmem %s1709_s13, 128  ;;  %p3138_p11 = scmp.lt.s32.totalorder %s1709_s13, %s1709_s13 }
 0x1ba   :  { %p3134_p10 = scmp.ne.s32.totalorder %s1709_s13, %s3133_s14  ;;  %p3139_p12 = scmp.lt.s32.totalorder %s3133_s14, %s3133_s14 }
 0x1bc   :  { %2787 = vmatpush3.bf16.xpose.msra.mxu1 %v3524_v36  ;;  %v3542_v36 = vpack.c.bf16 %v185_v35, %v184_v24  ;;  %v3551_v24 = vpack.c.bf16 %v171_v46, %v170_v49  ;;  %v174_v49 = vld [vmem:[#allocation2 + $0x360] sm:$0xff]  ;;  %v175_v46 = vld [vmem:[#allocation2 + $0x368] sm:$0xff]  ;;  %p3140_p13 = por %p3139_p12, %p3138_p11 }
 0x1bd   :  { %2788 = vmatprep.subr.bf16.mxu1 %v3193_v1 }
 0x1be   :  { %2811 = vmatpush3.bf16.xpose.msra.mxu0 %v3526_v45  ;;  %v3540_v45 = vpack.c.bf16 %v169_v22, %v168_v7  ;;  %3821 = vst [vmem:[#allocation23_spill] sm:$0xff] %v3542_v36  ;;  %v186_v7 = vld [vmem:[#allocation2 + $0x3c0] sm:$0xff]  ;;  %v187_v22 = vld [vmem:[#allocation2 + $0x3c8] sm:$0xff]  ;;  %3822 = vst [vmem:[#allocation24_spill] sm:$0xff] %v3551_v24  ;;  %p3141_p0 = pnand %p3140_p13, %p3134_p10 }
 0x1bf   :  { %2812 = vmatprep.subr.bf16.mxu0 %v3193_v1  ;;  %v3553_v35 = vpack.c.bf16 %v187_v22, %v186_v7  ;;  %v190_v7 = vld [vmem:[#allocation2 + $0x3e0] sm:$0xff]  ;;  %v191_v22 = vld [vmem:[#allocation2 + $0x3e8] sm:$0xff] }
 0x1c0   :  { %3820 = vst [vmem:[#allocation22_spill] sm:$0xff] %v3540_v45 }
 0x1c1   :  { %3823 = vst [vmem:[#allocation25_spill] sm:$0xff] %v3553_v35 }
 0x1c4   :  { %2790 = vmatpush3.bf16.xpose.msra.mxu1 %v3532_v5 }
 0x1c5   :  { %2791 = vmatprep.subr.bf16.mxu1 %v3193_v1 }
 0x1c6   :  { %2814 = vmatpush3.bf16.xpose.msra.mxu0 %v3534_v40  ;;  %v3559_v40 = vpack.c.bf16 %v173_v0, %v172_v47  ;;  %v192_v47 = vld [vmem:[#allocation2 + $0x3f0] sm:$0xff]  ;;  %v193_v0 = vld [vmem:[#allocation2 + $0x3f8] sm:$0xff] }
 0x1c7   :  { %2815 = vmatprep.subr.bf16.mxu0 %v3193_v1 }
 0x1c8   :  { %3824 = vst [vmem:[#allocation26_spill] sm:$0xff] %v3559_v40 }
 0x1cc   :  { %2793 = vmatpush3.bf16.xpose.msra.mxu1 %v3540_v45  ;;  %v188_v45 = vld [vmem:[#allocation2 + $0x3d0] sm:$0xff] }
 0x1cd   :  { %2794 = vmatprep.subr.bf16.mxu1 %v3193_v1 }
 0x1ce   :  { %2817 = vmatpush3.bf16.xpose.msra.mxu0 %v3542_v36  ;;  %v189_v36 = vld [vmem:[#allocation2 + $0x3d8] sm:$0xff] }
 0x1cf   :  { %2818 = vmatprep.subr.bf16.mxu0 %v3193_v1  ;;  %v3561_v5 = vpack.c.bf16 %v189_v36, %v188_v45  ;;  %v176_v36 = vld [vmem:[#allocation2 + $0x370] sm:$0xff]  ;;  %v177_v45 = vld [vmem:[#allocation2 + $0x378] sm:$0xff] }
 0x1d1   :  { %3825 = vst [vmem:[#allocation27_spill] sm:$0xff] %v3561_v5 }
 0x1d4   :  { %2796 = vmatpush3.bf16.xpose.msra.mxu1 %v3551_v24  ;;  %v3569_v24 = vpack.c.bf16 %v191_v22, %v190_v7  ;;  %v3826_v7 = vmov 0.0  }
 0x1d5   :  { %2797 = vmatprep.subr.bf16.mxu1 %v3193_v1 }
 0x1d6   :  { %2820 = vmatpush3.bf16.xpose.msra.mxu0 %v3553_v35  ;;  %v3567_v35 = vpack.c.bf16 %v175_v46, %v174_v49  ;;  %v344_v49 = vcombine.high %v3507_v4, %v3507_v4  ;;  %v346_v46 = vcombine.high %v3513_v6, %v3513_v6 }
 0x1d7   :  { %2821 = vmatprep.subr.bf16.mxu0 %v3193_v1 }
 0x1dc   :  { %2799 = vmatpush3.bf16.xpose.msra.mxu1 %v3559_v40  ;;  %v3577_v40 = vpack.c.bf16 %v193_v0, %v192_v47  ;;  %v3827_v0 = vlaneseq }
 0x1dd   :  { %2800 = vmatprep.subr.bf16.mxu1 %v3193_v1 }
 0x1de   :  { %2823 = vmatpush3.bf16.xpose.msra.mxu0 %v3561_v5  ;;  %v3575_v5 = vpack.c.bf16 %v177_v45, %v176_v36 }
 0x1df   :  { %2824 = vmatprep.subr.bf16.mxu0 %v3193_v1 }
 0x1e4   :  { %2802 = vmatpush3.bf16.xpose.msra.mxu1 %v3567_v35 }
 0x1e5   :  { %2803 = vmatprep.subr.bf16.mxu1 %v3193_v1 }
 0x1e6   :  { %2826 = vmatpush3.bf16.xpose.msra.mxu0 %v3569_v24 }
 0x1e7   :  { %2827 = vmatprep.subr.bf16.mxu0 %v3193_v1 }
 0x1ec   :  { %2805 = vmatpush3.bf16.xpose.msra.mxu1 %v3575_v5 }
 0x1ed   :  { %2830 = vmatprep.subr.bf16.mxu1 %v3193_v1 }
 0x1ee   :  { %2829 = vmatpush3.bf16.xpose.msra.mxu0 %v3577_v40 }
 0x1ef   :  { %2854 = vmatprep.subr.bf16.mxu0 %v3193_v1 }
 0x1f3   :  { %2254 = vmatmul.mubr.f32.vlgmr.msra.gmra.mrb[6].mxu1 %v344_v49  ;;  %v917_v49 = vand.u32 127, %v3827_v0  ;;  %v1593_v0 = vld [vmem:[#allocation7 + $0x68] sm:$0xff] }
 0x1f4   :  { %2832 = vmatpush3.bf16.msra.mxu1 %v3272_v30  ;;  %2323 = vmatprep.mubr.msk.f32.mxu1 %vm3194_vm0, %v3826_v7 }
 0x1f5   :  { %2289 = vmatmul.mubr.f32.vlgmr.msra.gmra.mrb[8].mxu0 %v346_v46  ;;  %2833 = vmatprep.subr.bf16.mxu1 %v3193_v1 }
 0x1f6   :  { %2856 = vmatpush3.bf16.msra.mxu0 %v3290_v3  ;;  %2358 = vmatprep.mubr.msk.f32.mxu0 %vm3194_vm0, %v3826_v7 }
 0x1f7   :  { %2857 = vmatprep.subr.bf16.mxu0 %v3193_v1 }
 0x1f8   :  { %2835 = vmatpush3.bf16.msra.mxu1 %v3276_v44 }
 0x1f9   :  { %2836 = vmatprep.subr.bf16.mxu1 %v3193_v1 }
 0x1fa   :  { %2859 = vmatpush3.bf16.msra.mxu0 %v3298_v9 }
 0x1fb   :  { %2860 = vmatprep.subr.bf16.mxu0 %v3193_v1 }
 0x1fc   :  { %2838 = vmatpush3.bf16.msra.mxu1 %v3280_v57 }
 0x1fd   :  { %2839 = vmatprep.subr.bf16.mxu1 %v3193_v1 }
 0x1fe   :  { %2862 = vmatpush3.bf16.msra.mxu0 %v3306_v15 }
 0x1ff   :  { %2863 = vmatprep.subr.bf16.mxu0 %v3193_v1 }
 0x200   :  { %2841 = vmatpush3.bf16.msra.mxu1 %v3288_v2 }
 0x201   :  { %2842 = vmatprep.subr.bf16.mxu1 %v3193_v1 }
 0x202   :  { %2865 = vmatpush3.bf16.msra.mxu0 %v3314_v21 }
 0x203   :  { %2866 = vmatprep.subr.bf16.mxu0 %v3193_v1 }
 0x204   :  { %2844 = vmatpush3.bf16.msra.mxu1 %v3296_v8 }
 0x205   :  { %2845 = vmatprep.subr.bf16.mxu1 %v3193_v1 }
 0x206   :  { %v421_v30 = vpop.f32.mrb[0].mxu1  ;;  %2868 = vmatpush3.bf16.msra.mxu0 %v3322_v27 }
 0x207   :  { %v2045_v44 = vpop.f32.mrb[1].mxu1  ;;  %2869 = vmatprep.subr.bf16.mxu0 %v3193_v1 }
 0x208   :  { %v491_v57 = vpop.f32.mrb[2].mxu0  ;;  %2847 = vmatpush3.bf16.msra.mxu1 %v3304_v14 }
 0x209   :  { %v930_v2 = vrot.slane %v491_v57, 7  ;;  %v2080_v3 = vpop.f32.mrb[3].mxu0  ;;  %2848 = vmatprep.subr.bf16.mxu1 %v3193_v1 }
 0x20a   :  { %2871 = vmatpush3.bf16.msra.mxu0 %v3328_v31 }
 0x20b   :  { %v932_v8 = vsel %vm931_vm1, %v930_v2, %v421_v30  ;;  %2872 = vmatprep.subr.bf16.mxu0 %v3193_v1 }
 0x20c   :  { %2850 = vmatpush3.bf16.msra.mxu1 %v3312_v20 }
 0x20d   :  { %2851 = vmatprep.subr.bf16.mxu1 %v3193_v1 }
 0x20e   :  { %2874 = vmatpush3.bf16.msra.mxu0 %v3332_v34 }
 0x20f   :  { %2875 = vmatprep.subr.bf16.mxu0 %v3193_v1 }
 0x210   :  { %2853 = vmatpush3.bf16.msra.mxu1 %v3320_v26 }
 0x211   :  { %2878 = vmatprep.subr.bf16.mxu1 %v3193_v1 }
 0x212   :  { %2877 = vmatpush3.bf16.msra.mxu0 %v3336_v37 }
 0x213   :  { %2902 = vmatprep.subr.bf16.mxu0 %v3193_v1 }
 0x237   :  { %v920_v30 = vpop.permute.xlu0 %919 }
 0x238   :  { %vm921_vm8 = vcmp.lt.s32.totalorder %v917_v49, %v920_v30  ;;  %v1595_v30 = vld [vmem:[#allocation7 + $0x78] sm:$0xff] }
 0x246   :  { %v561_v9 = vpop.f32.mrb[2].mxu1 }
 0x247   :  { %v933_v14 = vrot.slane %v561_v9, 6  ;;  %v2115_v15 = vpop.f32.mrb[3].mxu1 }
 0x248   :  { %v631_v21 = vpop.f32.mrb[4].mxu0 }
 0x249   :  { %v935_v20 = vsel %vm934_vm2, %v933_v14, %v932_v8  ;;  %v936_v27 = vrot.slane %v631_v21, 5  ;;  %v2150_v31 = vpop.f32.mrb[5].mxu0 }
 0x24b   :  { %v938_v34 = vsel %vm937_vm3, %v936_v27, %v935_v20 }
 0x286   :  { %v701_v4 = vpop.f32.mrb[4].mxu1 }
 0x287   :  { %v939_v26 = vrot.slane %v701_v4, 4  ;;  %v2185_v6 = vpop.f32.mrb[5].mxu1 }
 0x288   :  { %v771_v22 = vpop.f32.mrb[6].mxu0 }
 0x289   :  { %v941_v37 = vsel %vm940_vm4, %v939_v26, %v938_v34  ;;  %v942_v36 = vrot.slane %v771_v22, 3  ;;  %v2220_v45 = vpop.f32.mrb[7].mxu0 }
 0x28b   :  { %v944_v47 = vsel %vm943_vm5, %v942_v36, %v941_v37 }
 0x2c6   :  { %v841_v46 = vpop.f32.mrb[6].mxu1 }
 0x2c7   :  { %v945_v44 = vrot.slane %v841_v46, 2  ;;  %v2255_v57 = vpop.f32.mrb[7].mxu1  ;;  %v1594_v46 = vld [vmem:[#allocation7 + $0x70] sm:$0xff] }
 0x2c8   :  { %v911_v2 = vpop.f32.mrb[8].mxu0 }
 0x2c9   :  { %v948_v3 = vrot.slane %v911_v2, 1  ;;  %v2290_v8 = vpop.f32.mrb[9].mxu0  ;;  %v947_v9 = vsel %vm946_vm6, %v945_v44, %v944_v47  ;;  %v1592_v47 = vld [vmem:[#allocation7 + $0x60] sm:$0xff]  ;;  %v3044_v44 = vpack.c.bf16 %v1595_v30, %v1594_v46 }
 0x2ca   :  { %v3041_v49 = vpack.c.bf16 %v1593_v0, %v1592_v47 }
 0x2cb   :  { %v950_v14 = vsel %vm949_vm7, %v948_v3, %v947_v9 }
 0x2cc   :  { %v952_v15 = vsel %vm921_vm8, %v950_v14, -1e+30 }
 0x2cd   :  { %953 = vmax.xlane.f32.xlu0 %v952_v15 }
 0x35a   :  { %v954_v21 = vpop.xlane.xlu0 %953 }
 0x35b   :  { %v955_v20 = vsub.f32 %v952_v15, %v954_v21 }
 0x35d   :  { %v956_v27 = vmul.f32 1.442695, %v955_v20 }
 0x35f   :  { %3061 = vpow2.f32 %v956_v27 }
 0x369   :  { %v3062_v31 = vpop.eup %3061 }
 0x36a   :  { %958 = vadd.xlane.f32.xlu1 %v3062_v31 }
 0x3f7   :  { %v959_v34 = vpop.xlane.xlu1 %958 }
 0x3f8   :  { %3063 = vrcp.f32 %v959_v34 }
 0x402   :  { %v3064_v4 = vpop.eup %3063 }
 0x403   :  { %v3631_v26 = vmul.f32 %v3064_v4, %v3062_v31 }
 0x405   :  { %1691 = vst [vmem:[#allocation9] sm:$0xff] %v3631_v26  ;;  %v970_v6 = vrot.slane %v3631_v26, %v3345_v43 }
 0x407   :  { %v986_v22 = vrot.slane %v970_v6, %v3345_v43  ;;  %v978_v37 = vcombine.high %v970_v6, %v970_v6 }
 0x409   :  { %2324 = vmatmul.mubr.f32.vlgmr.msra.gmra.mrb[8].mxu1 %v986_v22  ;;  %v1000_v36 = vrot.slane %v978_v37, %v3345_v43 }
 0x40a   :  { %2880 = vmatpush3.bf16.msra.mxu1 %v3353_v52  ;;  %2393 = vmatprep.mubr.msk.f32.mxu1 %vm3194_vm0, %v3826_v7  ;;  %v1008_v52 = vcombine.high %v986_v22, %v986_v22 }
 0x40b   :  { %2359 = vmatmul.mubr.f32.vlgmr.msra.gmra.mrb[10].mxu0 %v1000_v36  ;;  %2881 = vmatprep.subr.bf16.mxu1 %v3193_v1 }
 0x40c   :  { %2904 = vmatpush3.bf16.msra.mxu0 %v3358_v55  ;;  %2428 = vmatprep.mubr.msk.f32.mxu0 %vm3194_vm0, %v3826_v7  ;;  %v1010_v55 = vcombine.high %v1000_v36, %v1000_v36 }
 0x40d   :  { %2905 = vmatprep.subr.bf16.mxu0 %v3193_v1 }
 0x40e   :  { %2883 = vmatpush3.bf16.msra.mxu1 %v3373_v62  ;;  %v963_v62 = vcombine.high %v3631_v26, %v3631_v26 }
 0x40f   :  { %2884 = vmatprep.subr.bf16.mxu1 %v3193_v1 }
 0x410   :  { %2907 = vmatpush3.bf16.msra.mxu0 %v3375_v63  ;;  %v977_v63 = vrot.slane %v963_v62, %v3345_v43 }
 0x411   :  { %2908 = vmatprep.subr.bf16.mxu0 %v3193_v1 }
 0x412   :  { %2886 = vmatpush3.bf16.msra.mxu1 %v3381_v10  ;;  %v979_v10 = vcombine.high %v977_v63, %v977_v63 }
 0x413   :  { %2887 = vmatprep.subr.bf16.mxu1 %v3193_v1 }
 0x414   :  { %2910 = vmatpush3.bf16.msra.mxu0 %v3383_v11  ;;  %v993_v11 = vrot.slane %v977_v63, %v3345_v43 }
 0x415   :  { %2911 = vmatprep.subr.bf16.mxu0 %v3193_v1 }
 0x416   :  { %2889 = vmatpush3.bf16.msra.mxu1 %v3389_v18  ;;  %v1007_v18 = vrot.slane %v979_v10, %v3345_v43  ;;  %v3831_v43 = vld [vmem:[#allocation19_spill] sm:$0xff] }
 0x417   :  { %2890 = vmatprep.subr.bf16.mxu1 %v3193_v1 }
 0x418   :  { %2913 = vmatpush3.bf16.msra.mxu0 %v3391_v19  ;;  %v3828_v19 = vld [vmem:[#allocation16_spill] sm:$0xff] }
 0x419   :  { %2914 = vmatprep.subr.bf16.mxu0 %v3193_v1 }
 0x41a   :  { %2892 = vmatpush3.bf16.msra.mxu1 %v3397_v28  ;;  %v3829_v28 = vld [vmem:[#allocation17_spill] sm:$0xff] }
 0x41b   :  { %2893 = vmatprep.subr.bf16.mxu1 %v3193_v1 }
 0x41c   :  { %2916 = vmatpush3.bf16.msra.mxu0 %v3399_v29  ;;  %v3830_v29 = vld [vmem:[#allocation18_spill] sm:$0xff] }
 0x41d   :  { %2917 = vmatprep.subr.bf16.mxu0 %v3193_v1 }
 0x41e   :  { %2895 = vmatpush3.bf16.msra.mxu1 %v3405_v38  ;;  %v3832_v38 = vld [vmem:[#allocation20_spill] sm:$0xff] }
 0x41f   :  { %2896 = vmatprep.subr.bf16.mxu1 %v3193_v1 }
 0x420   :  { %2919 = vmatpush3.bf16.msra.mxu0 %v3407_v39  ;;  %v3833_v39 = vld [vmem:[#allocation21_spill] sm:$0xff] }
 0x421   :  { %2920 = vmatprep.subr.bf16.mxu0 %v3193_v1 }
 0x422   :  { %2898 = vmatpush3.bf16.msra.mxu1 %v3413_v48  ;;  %v3834_v48 = vld [vmem:[#allocation22_spill] sm:$0xff] }
 0x423   :  { %2899 = vmatprep.subr.bf16.mxu1 %v3193_v1 }
 0x424   :  { %2922 = vmatpush3.bf16.msra.mxu0 %v3415_v50  ;;  %v3835_v50 = vld [vmem:[#allocation23_spill] sm:$0xff] }
 0x425   :  { %2923 = vmatprep.subr.bf16.mxu0 %v3193_v1 }
 0x426   :  { %2901 = vmatpush3.bf16.msra.mxu1 %v3421_v60  ;;  %v3836_v60 = vld [vmem:[#allocation24_spill] sm:$0xff] }
 0x427   :  { %2926 = vmatprep.subr.bf16.mxu1 %v3193_v1 }
 0x428   :  { %2925 = vmatpush3.bf16.msra.mxu0 %v3423_v61  ;;  %v3837_v61 = vld [vmem:[#allocation25_spill] sm:$0xff] }
 0x429   :  { %2394 = vmatmul.mubr.f32.vlgmr.msra.gmra.mrb[10].mxu1 %v1008_v52  ;;  %2950 = vmatprep.subr.bf16.mxu0 %v3193_v1 }
 0x42a   :  { %2928 = vmatpush3.bf16.msra.mxu1 %v3429_v12  ;;  %2463 = vmatprep.mubr.msk.f32.mxu1 %vm3194_vm0, %v3826_v7  ;;  %v3838_v12 = vld [vmem:[#allocation26_spill] sm:$0xff] }
 0x42b   :  { %2429 = vmatmul.mubr.f32.vlgmr.msra.gmra.mrb[12].mxu0 %v1010_v55  ;;  %2929 = vmatprep.subr.bf16.mxu1 %v3193_v1 }
 0x42c   :  { %2952 = vmatpush3.bf16.msra.mxu0 %v3433_v16  ;;  %2498 = vmatprep.mubr.msk.f32.mxu0 %vm3194_vm0, %v3826_v7  ;;  %v3839_v16 = vld [vmem:[#allocation27_spill] sm:$0xff] }
 0x42d   :  { %2953 = vmatprep.subr.bf16.mxu0 %v3193_v1 }
 0x42e   :  { %2931 = vmatpush3.bf16.msra.mxu1 %v3445_v56  ;;  %v1009_v56 = vcombine.high %v993_v11, %v993_v11 }
 0x42f   :  { %2932 = vmatprep.subr.bf16.mxu1 %v3193_v1 }
 0x430   :  { %2955 = vmatpush3.bf16.msra.mxu0 %v3447_v25  ;;  %v1011_v25 = vcombine.high %v1007_v18, %v1007_v18 }
 0x431   :  { %2956 = vmatprep.subr.bf16.mxu0 %v3193_v1 }
 0x432   :  { %2934 = vmatpush3.bf16.msra.mxu1 %v3453_v41  ;;  %v1580_v41 = vld [vmem:[#allocation7] sm:$0xff] }
 0x433   :  { %2935 = vmatprep.subr.bf16.mxu1 %v3193_v1 }
 0x434   :  { %2958 = vmatpush3.bf16.msra.mxu0 %v3455_v42  ;;  %v1581_v42 = vld [vmem:[#allocation7 + $0x8] sm:$0xff] }
 0x435   :  { %2959 = vmatprep.subr.bf16.mxu0 %v3193_v1 }
 0x436   :  { %2937 = vmatpush3.bf16.msra.mxu1 %v3461_v58  ;;  %v3023_v58 = vpack.c.bf16 %v1581_v42, %v1580_v41 }
 0x437   :  { %2938 = vmatprep.subr.bf16.mxu1 %v3193_v1 }
 0x438   :  { %2961 = vmatpush3.bf16.msra.mxu0 %v3463_v59  ;;  %v1582_v59 = vld [vmem:[#allocation7 + $0x10] sm:$0xff] }
 0x439   :  { %2962 = vmatprep.subr.bf16.mxu0 %v3193_v1 }
 0x43a   :  { %2940 = vmatpush3.bf16.msra.mxu1 %v3469_v13  ;;  %v1583_v13 = vld [vmem:[#allocation7 + $0x18] sm:$0xff] }
 0x43b   :  { %2941 = vmatprep.subr.bf16.mxu1 %v3193_v1 }
 0x43c   :  { %2964 = vmatpush3.bf16.msra.mxu0 %v3471_v17  ;;  %v3026_v17 = vpack.c.bf16 %v1583_v13, %v1582_v59 }
 0x43d   :  { %2965 = vmatprep.subr.bf16.mxu0 %v3193_v1 }
 0x43e   :  { %2943 = vmatpush3.bf16.msra.mxu1 %v3477_v32  ;;  %v1584_v32 = vld [vmem:[#allocation7 + $0x20] sm:$0xff] }
 0x43f   :  { %2944 = vmatprep.subr.bf16.mxu1 %v3193_v1 }
 0x440   :  { %2967 = vmatpush3.bf16.msra.mxu0 %v3479_v33  ;;  %v1585_v33 = vld [vmem:[#allocation7 + $0x28] sm:$0xff] }
 0x441   :  { %2968 = vmatprep.subr.bf16.mxu0 %v3193_v1 }
 0x442   :  { %2946 = vmatpush3.bf16.msra.mxu1 %v3485_v51  ;;  %v3029_v51 = vpack.c.bf16 %v1585_v33, %v1584_v32 }
 0x443   :  { %2947 = vmatprep.subr.bf16.mxu1 %v3193_v1 }
 0x444   :  { %2970 = vmatpush3.bf16.msra.mxu0 %v3487_v53  ;;  %v1587_v53 = vld [vmem:[#allocation7 + $0x38] sm:$0xff] }
 0x445   :  { %2971 = vmatprep.subr.bf16.mxu0 %v3193_v1 }
 0x446   :  { %2949 = vmatpush3.bf16.msra.mxu1 %v3495_v23 }
 0x447   :  { %2974 = vmatprep.subr.bf16.mxu1 %v3193_v1 }
 0x448   :  { %2973 = vmatpush3.bf16.msra.mxu0 %v3497_v54  ;;  %v1588_v54 = vld [vmem:[#allocation7 + $0x40] sm:$0xff] }
 0x449   :  { %2464 = vmatmul.mubr.f32.vlgmr.msra.gmra.mrb[12].mxu1 %v993_v11  ;;  %2998 = vmatprep.subr.bf16.mxu0 %v3193_v1 }
 0x44a   :  { %2976 = vmatpush3.bf16.msra.mxu1 %v3828_v19  ;;  %2533 = vmatprep.mubr.msk.f32.mxu1 %vm3194_vm0, %v3826_v7 }
 0x44b   :  { %2499 = vmatmul.mubr.f32.vlgmr.msra.gmra.mrb[14].mxu0 %v1007_v18  ;;  %2977 = vmatprep.subr.bf16.mxu1 %v3193_v1 }
 0x44c   :  { %3000 = vmatpush3.bf16.msra.mxu0 %v3829_v28  ;;  %2568 = vmatprep.mubr.msk.f32.mxu0 %vm3194_vm0, %v3826_v7 }
 0x44d   :  { %3001 = vmatprep.subr.bf16.mxu0 %v3193_v1 }
 0x44e   :  { %2979 = vmatpush3.bf16.msra.mxu1 %v3830_v29 }
 0x44f   :  { %2980 = vmatprep.subr.bf16.mxu1 %v3193_v1 }
 0x450   :  { %3003 = vmatpush3.bf16.msra.mxu0 %v3831_v43 }
 0x451   :  { %3004 = vmatprep.subr.bf16.mxu0 %v3193_v1 }
 0x452   :  { %2982 = vmatpush3.bf16.msra.mxu1 %v3832_v38 }
 0x453   :  { %2983 = vmatprep.subr.bf16.mxu1 %v3193_v1 }
 0x454   :  { %3006 = vmatpush3.bf16.msra.mxu0 %v3833_v39 }
 0x455   :  { %3007 = vmatprep.subr.bf16.mxu0 %v3193_v1 }
 0x456   :  { %2985 = vmatpush3.bf16.msra.mxu1 %v3834_v48 }
 0x457   :  { %2986 = vmatprep.subr.bf16.mxu1 %v3193_v1 }
 0x458   :  { %3009 = vmatpush3.bf16.msra.mxu0 %v3835_v50 }
 0x459   :  { %3010 = vmatprep.subr.bf16.mxu0 %v3193_v1 }
 0x45a   :  { %2988 = vmatpush3.bf16.msra.mxu1 %v3836_v60 }
 0x45b   :  { %2989 = vmatprep.subr.bf16.mxu1 %v3193_v1 }
 0x45c   :  { %3012 = vmatpush3.bf16.msra.mxu0 %v3837_v61 }
 0x45d   :  { %3013 = vmatprep.subr.bf16.mxu0 %v3193_v1 }
 0x45e   :  { %2991 = vmatpush3.bf16.msra.mxu1 %v3838_v12 }
 0x45f   :  { %2992 = vmatprep.subr.bf16.mxu1 %v3193_v1 }
 0x460   :  { %3015 = vmatpush3.bf16.msra.mxu0 %v3839_v16 }
 0x461   :  { %3016 = vmatprep.subr.bf16.mxu0 %v3193_v1 }
 0x462   :  { %2994 = vmatpush3.bf16.msra.mxu1 %v3567_v35  ;;  %v1590_v35 = vld [vmem:[#allocation7 + $0x50] sm:$0xff] }
 0x463   :  { %2995 = vmatprep.subr.bf16.mxu1 %v3193_v1 }
 0x464   :  { %3018 = vmatpush3.bf16.msra.mxu0 %v3569_v24 }
 0x465   :  { %3019 = vmatprep.subr.bf16.mxu0 %v3193_v1 }
 0x466   :  { %2997 = vmatpush3.bf16.msra.mxu1 %v3575_v5  ;;  %v1589_v5 = vld [vmem:[#allocation7 + $0x48] sm:$0xff] }
 0x467   :  { %3022 = vmatprep.subr.bf16.mxu1 %v3193_v1  ;;  %v3035_v24 = vpack.c.bf16 %v1589_v5, %v1588_v54 }
 0x468   :  { %3021 = vmatpush3.bf16.msra.mxu0 %v3577_v40  ;;  %v1586_v40 = vld [vmem:[#allocation7 + $0x30] sm:$0xff] }
 0x469   :  { %2534 = vmatmul.mubr.f32.vlgmr.msra.gmra.mrb[14].mxu1 %v1009_v56  ;;  %v3032_v23 = vpack.c.bf16 %v1587_v53, %v1586_v40 }
 0x46a   :  { %2603 = vmatprep.mubr.msk.f32.mxu1 %vm3194_vm0, %v3826_v7  ;;  %3024 = vmatpush3.bf16.msra.mxu1 %v3023_v58  ;;  %v1591_v7 = vld [vmem:[#allocation7 + $0x58] sm:$0xff] }
 0x46b   :  { %2569 = vmatmul.mubr.f32.vlgmr.msra.gmra.mrb[16].mxu0 %v1011_v25  ;;  %3025 = vmatprep.subr.bf16.mxu1 %v3193_v1  ;;  %v3038_v45 = vpack.c.bf16 %v1591_v7, %v1590_v35 }
 0x46e   :  { %3027 = vmatpush3.bf16.msra.mxu1 %v3026_v17 }
 0x46f   :  { %3028 = vmatprep.subr.bf16.mxu1 %v3193_v1 }
 0x472   :  { %3030 = vmatpush3.bf16.msra.mxu1 %v3029_v51 }
 0x473   :  { %3031 = vmatprep.subr.bf16.mxu1 %v3193_v1 }
 0x476   :  { %3033 = vmatpush3.bf16.msra.mxu1 %v3032_v23 }
 0x477   :  { %3034 = vmatprep.subr.bf16.mxu1 %v3193_v1 }
 0x47a   :  { %3036 = vmatpush3.bf16.msra.mxu1 %v3035_v24 }
 0x47b   :  { %3037 = vmatprep.subr.bf16.mxu1 %v3193_v1 }
 0x47e   :  { %3039 = vmatpush3.bf16.msra.mxu1 %v3038_v45 }
 0x47f   :  { %3040 = vmatprep.subr.bf16.mxu1 %v3193_v1 }
 0x482   :  { %3042 = vmatpush3.bf16.msra.mxu1 %v3041_v49 }
 0x483   :  { %3043 = vmatprep.subr.bf16.mxu1 %v3193_v1 }
 0x486   :  { %3045 = vmatpush3.bf16.msra.mxu1 %v3044_v44 }
 0x4dc   :  { %v1086_v57 = vpop.f32.mrb[8].mxu1 }
 0x4dd   :  { %v2325_v2 = vpop.f32.mrb[9].mxu1 }
 0x4de   :  { %v1156_v3 = vpop.f32.mrb[10].mxu0 }
 0x4df   :  { %v1604_v8 = vrot.slane %v1156_v3, 7  ;;  %v2360_v9 = vpop.f32.mrb[11].mxu0 }
 0x4e1   :  { %v1605_v14 = vsel %vm931_vm1, %v1604_v8, %v1086_v57 }
 0x4fc   :  { %v1226_v15 = vpop.f32.mrb[10].mxu1 }
 0x4fd   :  { %v1606_v21 = vrot.slane %v1226_v15, 6  ;;  %v2395_v20 = vpop.f32.mrb[11].mxu1 }
 0x4fe   :  { %v1296_v27 = vpop.f32.mrb[12].mxu0 }
 0x4ff   :  { %v1607_v31 = vsel %vm934_vm2, %v1606_v21, %v1605_v14  ;;  %v1608_v34 = vrot.slane %v1296_v27, 5  ;;  %v2430_v4 = vpop.f32.mrb[13].mxu0 }
 0x501   :  { %v1609_v1 = vsel %vm937_vm3, %v1608_v34, %v1607_v31 }
 0x51c   :  { %v1366_v26 = vpop.f32.mrb[12].mxu1 }
 0x51d   :  { %v1610_v6 = vrot.slane %v1366_v26, 4  ;;  %v2465_v22 = vpop.f32.mrb[13].mxu1 }
 0x51e   :  { %v1436_v37 = vpop.f32.mrb[14].mxu0 }
 0x51f   :  { %v1611_v36 = vsel %vm940_vm4, %v1610_v6, %v1609_v1  ;;  %v1612_v52 = vrot.slane %v1436_v37, 3  ;;  %v2500_v55 = vpop.f32.mrb[15].mxu0 }
 0x521   :  { %v1613_v62 = vsel %vm943_vm5, %v1612_v52, %v1611_v36 }
 0x53c   :  { %v1506_v63 = vpop.f32.mrb[14].mxu1 }
 0x53d   :  { %v1614_v10 = vrot.slane %v1506_v63, 2  ;;  %v2535_v11 = vpop.f32.mrb[15].mxu1 }
 0x53e   :  { %v1576_v18 = vpop.f32.mrb[16].mxu0 }
 0x53f   :  { %v1615_v19 = vsel %vm946_vm6, %v1614_v10, %v1613_v62  ;;  %v1616_v28 = vrot.slane %v1576_v18, 1  ;;  %v2570_v29 = vpop.f32.mrb[17].mxu0 }
 0x541   :  { %v1617_v43 = vsel %vm949_vm7, %v1616_v28, %v1615_v19 }
 0x542   :  { %2604 = vmatmul.mubr.f32.vlgmr.msra.gmra.mrb[16].mxu1 %v1617_v43 }
 0x543   :  { %3144 = shalt.err (!%p3141_p0)
}
 0x544   :  { %s3145_s17 = scalar_lea.hbm %s3797_s6, 128 }
 0x545   :  { %p3146_p1 = scmp.ne.s32.totalorder %s3797_s6, %s3145_s17  ;;  %p3149_p2 = scmp.lt.u32.totalorder %s3145_s17, %s3797_s6 }
 0x547   :  { %p3151_p3 = pnand %p3149_p2, %p3146_p1 }
 0x549   :  { %3154 = shalt.err (!%p3151_p3)
}
 0x54a   :  { %1711 = dma.vmem_to_hbm [thread:$0]  %s1709_s13, 128, %s3797_s6, [#allocation10]   ;;  %v3840_v39 = vld [vmem:[#allocation15_spill] sm:$0xff] }
 0x54b   :  { %s3198_s23 = smov [#allocation8]  }
 0x54c   :  { %s1698_s24 = sshll.u32 %s3198_s23, 4  ;;  %s1699_s24 = int_to_ptr.vmem [resolvable:$true] %s1698_s24 }
 0x54d   :  { %s3155_s25 = scalar_lea.vmem %s1699_s24, 128  ;;  %p3160_p5 = scmp.lt.s32.totalorder %s1699_s24, %s1699_s24 }
 0x54e   :  { %p3156_p4 = scmp.ne.s32.totalorder %s1699_s24, %s3155_s25  ;;  %p3161_p6 = scmp.lt.s32.totalorder %s3155_s25, %s3155_s25 }
 0x550   :  { %p3162_p7 = por %p3161_p6, %p3160_p5 }
 0x552   :  { %p3163_p8 = pnand %p3162_p7, %p3156_p4 }
 0x615   :  { %v1685_v38 = vpop.f32.mrb[16].mxu1 }
 0x616   :  { %v1686_v48 = vadd.f32 %v1685_v38, %v3840_v39  ;;  %v2605_v50 = vpop.f32.mrb[17].mxu1 }
 0x618   :  { %3065 = vtanh.f32 %v1686_v48 }
 0x622   :  { %v3066_v60 = vpop.eup %3065 }
 0x623   :  { %1690 = vst [vmem:[#allocation8] sm:$0xff] %v3066_v60 }
 0x624   :  { %3166 = shalt.err (!%p3163_p8)
}
 0x625   :  { %s3167_s6 = scalar_lea.hbm %s3796_s5, 128 }
 0x626   :  { %p3168_p9 = scmp.ne.s32.totalorder %s3796_s5, %s3167_s6  ;;  %p3171_p10 = scmp.lt.u32.totalorder %s3167_s6, %s3796_s5 }
 0x628   :  { %p3173_p11 = pnand %p3171_p10, %p3168_p9 }
 0x62a   :  { %3176 = shalt.err (!%p3173_p11)
}
 0x62b   :  { %1701 = dma.vmem_to_hbm [thread:$0]  %s1699_s24, 128, %s3796_s5, [#allocation4]  }
 0x62c   :  { %3181 = dma.done.wait [#allocation4], 128  }
 0x62d   :  { %3182 = vsyncadd [#allocation4], 4294967168 }
 0x62e   :  { %3183 = dma.done.wait [#allocation10], 128  }
 0x62f   :  { %3184 = vsyncadd [#allocation10], 4294967168 }
 0x630   :  { %1718 = vsyncpa [#allocation3], 1 }
 0x631   :  { %1719 = vsyncpa [#allocation6], 1 }
 0x632   :  { %1720 = vsyncpa [#allocation4], 1 }
 0x633   :  { %1721 = vsyncpa [#allocation10], 1 }

</bundles_post_ra>
